<compile_context>
chip_gen: v7x
topology: tpu7x:2x2x1
jax: 0.10.0
libtpu: 0.0.40
codegen_flags: <defaults>
</compile_context>

<pallas_src>
import math
import statistics
from functools import partial

import jax
import jax.numpy as jnp
from jax.experimental import pallas as pl
from jax.experimental.pallas import tpu as pltpu


def _gelu_tanh(x):
    # gelu_pytorch_tanh: 0.5*x*(1+tanh(sqrt(2/pi)*(x+0.044715*x^3)))
    c = math.sqrt(2.0 / math.pi)
    return 0.5 * x * (1.0 + jnp.tanh(c * (x + 0.044715 * x * x * x)))


# --------------------------- dense (no sparsity) ---------------------------
def _mlp_dense_kernel(x_ref, wgu_ref, wd_ref, o_ref, acc_ref, *, nk, tk):
    k = pl.program_id(1)

    @pl.when(k == 0)
    def _():
        acc_ref[...] = jnp.zeros_like(acc_ref)

    x = x_ref[...]
    # single wide matmul: (tm, H) x (H, 2*tk) -> (tm, 2*tk); split gate/up.
    gu = jnp.dot(x, wgu_ref[...], preferred_element_type=jnp.float32)
    act = _gelu_tanh(gu[:, :tk]) * gu[:, tk:]
    acc_ref[...] += jnp.dot(act.astype(wd_ref.dtype), wd_ref[...],
                            preferred_element_type=jnp.float32)

    @pl.when(k == nk - 1)
    def _():
        o_ref[...] = acc_ref[...].astype(o_ref.dtype)


# ----------------- sparse (gaussian top-k), two passes over k --------------
def _mlp_sparse_kernel(x_ref, wgu_ref, wd_ref, o_ref,
                       acc_ref, gate_ref, up_ref, ssum_ref, ssq_ref, cut_ref,
                       *, nk, tk, inv_i, std_multiplier):
    k = pl.program_id(1)

    @pl.when(k == 0)
    def _():
        acc_ref[...] = jnp.zeros_like(acc_ref)
        ssum_ref[...] = jnp.zeros_like(ssum_ref)
        ssq_ref[...] = jnp.zeros_like(ssq_ref)

    # ---- pass 1 (k in [0, nk)): gate/up projection + stats accumulation ----
    @pl.when(k < nk)
    def _():
        x = x_ref[...]
        gu = jnp.dot(x, wgu_ref[...], preferred_element_type=jnp.float32)
        g = gu[:, :tk]                         # f32
        gate_ref[k] = g.astype(gate_ref.dtype)
        up_ref[k] = gu[:, tk:].astype(up_ref.dtype)
        # stats accumulated from the f32 matmul result (precision independent
        # of the scratch storage dtype).  Note torch reference uses
        # unbiased=False, i.e. a 1/I divisor, which inv_i matches.
        ssum_ref[...] += jnp.sum(g, axis=-1, keepdims=True)
        ssq_ref[...] += jnp.sum(g * g, axis=-1, keepdims=True)

    # ---- end of pass 1: cutoff = mean + std * icdf(sparsity) ----
    @pl.when(k == nk - 1)
    def _():
        mean = ssum_ref[...] * inv_i
        # Single-pass variance in f32; gate activations are ~zero-mean so the
        # E[x^2]-E[x]^2 cancellation is benign at f32 accumulation precision.
        var = jnp.maximum(ssq_ref[...] * inv_i - mean * mean, 0.0)
        cut_ref[...] = mean + jnp.sqrt(var) * jnp.float32(std_multiplier)

    # ---- pass 2 (k in [nk, 2nk)): relu cutoff + gelu*up + down projection ----
    @pl.when(k >= nk)
    def _():
        kk = k - nk
        g = jnp.maximum(gate_ref[kk].astype(jnp.float32) - cut_ref[...], 0.0)
        u = up_ref[kk].astype(jnp.float32)
        act = _gelu_tanh(g) * u
        acc_ref[...] += jnp.dot(act.astype(wd_ref.dtype), wd_ref[...],
                                preferred_element_type=jnp.float32)

    @pl.when(k == 2 * nk - 1)
    def _():
        o_ref[...] = acc_ref[...].astype(o_ref.dtype)


def _pick_tk(intermediate_size, max_tk=512):
    """Largest multiple of 128 that divides I and is <= max_tk, else I."""
    best = None
    t = 128
    while t <= min(intermediate_size, max_tk):
        if intermediate_size % t == 0:
            best = t
        t += 128
    return best if best is not None else intermediate_size


def _device_caps():
    """(tm_cap, vmem_cap_bytes) per TPU generation."""
    kind = ""
    try:
        kind = jax.devices()[0].device_kind.lower()
    except Exception:
        pass
    if "v6" in kind:
        # 128 MiB physical VMEM, highest machine balance -> big token tiles.
        return 512, 96 * 2**20
    if "v5" in kind:
        # 128 MiB physical VMEM; balance ~240 FLOP/byte -> tm=256 suffices.
        return 256, 96 * 2**20
    # v7x (64 MiB physical per TC) and unknown: be conservative.
    return 256, 48 * 2**20


def gemma3n_text_mlp(x, w_gate, w_up, w_down, *, activation_sparsity=0.0,
                     tm=None, tk=None, vmem_limit_bytes=None):
    """x: [T, H]; w_gate/w_up: [H, I]; w_down: [I, H]  ->  [T, H]"""
    T, H = x.shape
    I = w_gate.shape[1]
    assert w_gate.shape == (H, I)
    assert w_up.shape == (H, I)
    assert w_down.shape == (I, H)

    x_bytes = jnp.dtype(x.dtype).itemsize
    w_bytes = jnp.dtype(w_gate.dtype).itemsize
    out_dtype = x.dtype
    out_bytes = jnp.dtype(out_dtype).itemsize

    sparse = activation_sparsity > 0.0
    # gate/up scratch dtype: bf16 when activations are 16-bit (halves VMEM),
    # f32 otherwise.
    s_dtype = x.dtype if jnp.dtype(x.dtype).itemsize <= 2 else jnp.float32
    s_bytes = jnp.dtype(s_dtype).itemsize

    tm_cap, vmem_cap = _device_caps()

    # --- intermediate-dim tile ---
    if tk is None:
        tk = _pick_tk(I, max_tk=512)
    assert I % tk == 0 and (tk % 128 == 0 or tk == I)
    nk = I // tk

    # --- explicit VMEM budget (double-buffered tiles + scratch) ---
    def budget(tm_):
        b = 2 * tm_ * H * x_bytes              # x tiles
        b += 2 * H * (2 * tk) * w_bytes        # merged gate_up weight tiles
        b += 2 * tk * H * w_bytes              # down-proj weight tiles
        b += 2 * tm_ * H * out_bytes           # output tiles
        b += tm_ * H * 4                       # f32 accumulator scratch
        if sparse:
            b += 2 * nk * tm_ * tk * s_bytes   # gate + up scratch (full I)
            b += 3 * tm_ * 128 * 4             # ssum/ssq/cutoff (lane padded)
        return int(b * 1.15)                   # headroom

    # --- token tile (MXU-sized, generation/VMEM aware) ---
    if tm is None:
        mult = 16 if jnp.dtype(x.dtype).itemsize <= 2 else 8
        if T <= 128:
            # decode-sized: round T up to the sublane-packing multiple.
            tm = max(mult, -(-T // mult) * mult)
        else:
            t_cap = min(tm_cap, -(-T // 128) * 128)
            tm = 128
            for cand in (512, 256, 128):
                if cand <= t_cap and budget(cand) <= vmem_cap:
                    tm = cand
                    break
    Tp = -(-T // tm) * tm
    x_p = jnp.pad(x, ((0, Tp - T), (0, 0))) if Tp != T else x
    nt = Tp // tm

    if vmem_limit_bytes is None:
        vmem_limit_bytes = min(max(budget(tm), 32 * 2**20), 128 * 2**20)

    # --- merged gate_up weight, interleaved per tk tile: block k of width
    # 2*tk is [gate tile k | up tile k].  In a real model this interleave is
    # done once at weight-load time; here it is a cheap wrapper-side prep. ---
    w_gu = jnp.concatenate(
        [w_gate.reshape(H, nk, tk), w_up.reshape(H, nk, tk)], axis=2
    ).reshape(H, 2 * I)

    cost = pl.CostEstimate(
        flops=6 * Tp * H * I,
        transcendentals=Tp * I,
        bytes_accessed=int(
            Tp * H * x_bytes                           # x (resident over k)
            + nt * (3 * H * I) * w_bytes               # weights, per token tile
            + Tp * H * out_bytes),
    )

    compiler_params = pltpu.CompilerParams(
        dimension_semantics=("parallel", "arbitrary"),
        vmem_limit_bytes=int(vmem_limit_bytes),
    )

    x_spec = pl.BlockSpec((tm, H), lambda i, k: (i, 0))
    out_spec = pl.BlockSpec((tm, H), lambda i, k: (i, 0))

    if sparse:
        # icdf of standard normal at `activation_sparsity` (matches the torch
        # buffer -> Normal(0,1).icdf in the reference).
        std_multiplier = statistics.NormalDist().inv_cdf(float(activation_sparsity))
        kernel = partial(_mlp_sparse_kernel, nk=nk, tk=tk, inv_i=1.0 / I,
                         std_multiplier=std_multiplier)
        grid = (nt, 2 * nk)
        # pass 1 uses gate_up tile min(k, nk-1); pass 2 uses down tile k-nk.
        # Clamps keep each weight tile DMA'd once per token tile.
        wgu_spec = pl.BlockSpec((H, 2 * tk), lambda i, k: (0, jnp.minimum(k, nk - 1)))
        wd_spec = pl.BlockSpec((tk, H), lambda i, k: (jnp.maximum(k - nk, 0), 0))
        scratch = [
            pltpu.VMEM((tm, H), jnp.float32),       # down-proj accumulator
            pltpu.VMEM((nk, tm, tk), s_dtype),      # gate tiles
            pltpu.VMEM((nk, tm, tk), s_dtype),      # up tiles
            pltpu.VMEM((tm, 1), jnp.float32),       # running sum(gate)
            pltpu.VMEM((tm, 1), jnp.float32),       # running sum(gate^2)
            pltpu.VMEM((tm, 1), jnp.float32),       # cutoff
        ]
    else:
        kernel = partial(_mlp_dense_kernel, nk=nk, tk=tk)
        grid = (nt, nk)
        wgu_spec = pl.BlockSpec((H, 2 * tk), lambda i, k: (0, k))
        wd_spec = pl.BlockSpec((tk, H), lambda i, k: (k, 0))
        scratch = [pltpu.VMEM((tm, H), jnp.float32)]

    out = pl.pallas_call(
        kernel,
        out_shape=jax.ShapeDtypeStruct((Tp, H), out_dtype),
        grid_spec=pltpu.PrefetchScalarGridSpec(
            num_scalar_prefetch=0,
            grid=grid,
            in_specs=[x_spec, wgu_spec, wd_spec],
            out_specs=out_spec,
            scratch_shapes=scratch,
        ),
        compiler_params=compiler_params,
        cost_estimate=cost,
    )(x_p, w_gu, w_down)

    if Tp != T:
        out = out[:T]
    return out


def _reference(x, w_gate, w_up, w_down, activation_sparsity):
    xf = x.astype(jnp.float32)
    gate = xf @ w_gate.astype(jnp.float32)
    up = xf @ w_up.astype(jnp.float32)
    if activation_sparsity > 0.0:
        m = statistics.NormalDist().inv_cdf(float(activation_sparsity))
        mean = jnp.mean(gate, axis=-1, keepdims=True)
        std = jnp.sqrt(jnp.mean((gate - mean) ** 2, axis=-1, keepdims=True))
        gate = jax.nn.relu(gate - (mean + std * jnp.float32(m)))
    act = _gelu_tanh(gate) * up
    return act @ w_down.astype(jnp.float32)


if __name__ == "__main__":
    # Small synthetic config consistent with the module's __init__.
    T = 200            # flattened batch*seq tokens (exercises padding to tm)
    H = 128            # hidden_size (lane-dense)
    I = 512            # intermediate_size
    activation_sparsity = 0.95   # Gemma3n uses 0.95 on early layers

    key = jax.random.PRNGKey(0)
    kx, kgu, kd = jax.random.split(key, 3)
    x32 = jax.random.normal(kx, (T, H), dtype=jnp.float32)
    w_gate_up32 = jax.random.normal(kgu, (H, 2 * I), dtype=jnp.float32) * (1.0 / math.sqrt(H))
    w_down32 = jax.random.normal(kd, (I, H), dtype=jnp.float32) * (1.0 / math.sqrt(I))
    w_gate32, w_up32 = w_gate_up32[:, :I], w_gate_up32[:, I:]

    # Production dtype: bf16 activations + weights (per perf review).
    xb = x32.astype(jnp.bfloat16)
    wgb = w_gate32.astype(jnp.bfloat16)
    wub = w_up32.astype(jnp.bfloat16)
    wdb = w_down32.astype(jnp.bfloat16)

    # Sparse path (two-pass kernel), explicit small tiles so nt > 1, nk > 1.
    out_sp = gemma3n_text_mlp(xb, wgb, wub, wdb,
                              activation_sparsity=activation_sparsity,
                              tm=128, tk=128)
    jax.block_until_ready(out_sp)
    ref_sp = _reference(xb, wgb, wub, wdb, activation_sparsity)
    assert out_sp.shape == (T, H) and out_sp.dtype == jnp.bfloat16
    assert jnp.allclose(out_sp.astype(jnp.float32), ref_sp, atol=2e-2, rtol=2e-2), \
        "bf16 sparse path mismatch vs reference"

    # Dense path (later layers: activation_sparsity == 0), auto tiling
    # (generation-aware tm/tk and explicit vmem_limit_bytes).
    out_dn = gemma3n_text_mlp(xb, wgb, wub, wdb, activation_sparsity=0.0)
    jax.block_until_ready(out_dn)
    ref_dn = _reference(xb, wgb, wub, wdb, 0.0)
    assert jnp.allclose(out_dn.astype(jnp.float32), ref_dn, atol=2e-2, rtol=2e-2), \
        "bf16 dense path mismatch vs reference"

    # f32 precision check of the sparse path (tighter tolerance).
    out_sp32 = gemma3n_text_mlp(x32, w_gate32, w_up32, w_down32,
                                activation_sparsity=activation_sparsity,
                                tm=128, tk=128)
    jax.block_until_ready(out_sp32)
    ref_sp32 = _reference(x32, w_gate32, w_up32, w_down32, activation_sparsity)
    assert jnp.allclose(out_sp32, ref_sp32.astype(jnp.float32), atol=5e-3, rtol=5e-3), \
        "f32 sparse path mismatch vs reference"

    print("KERNEL_OK")
</pallas_src>

<mosaic_0001>
module attributes {stable_mosaic.version = 11 : i64} {
  func.func @_mlp_sparse_kernel(%arg0: i32, %arg1: i32, %arg2: memref<128x128xbf16, #tpu.memory_space<vmem>>, %arg3: memref<128x256xbf16, #tpu.memory_space<vmem>>, %arg4: memref<128x128xbf16, #tpu.memory_space<vmem>>, %arg5: memref<128x128xbf16, #tpu.memory_space<vmem>>, %arg6: memref<128x128xf32, #tpu.memory_space<vmem>>, %arg7: memref<4x128x128xbf16, #tpu.memory_space<vmem>>, %arg8: memref<4x128x128xbf16, #tpu.memory_space<vmem>>, %arg9: memref<128x1xf32, #tpu.memory_space<vmem>>, %arg10: memref<128x1xf32, #tpu.memory_space<vmem>>, %arg11: memref<128x1xf32, #tpu.memory_space<vmem>>) attributes {dimension_semantics = [#tpu.dimension_semantics<parallel>, #tpu.dimension_semantics<arbitrary>], iteration_bounds = array<i64: 2, 8>, scalar_prefetch = 0 : i64, scratch_operands = 6 : i64, tpu.core_type = #tpu.core_type<tc>, window_params = [{transform_indices = @transform_0, window_bounds = array<i64: 128, 128>}, {transform_indices = @transform_1, window_bounds = array<i64: 128, 256>}, {transform_indices = @transform_2, window_bounds = array<i64: 128, 128>}, {transform_indices = @transform_3, window_bounds = array<i64: 128, 128>}]} {
    %c0_i32 = arith.constant 0 : i32
    %0 = arith.cmpi eq, %arg1, %c0_i32 : i32
    %1 = arith.extui %0 : i1 to i32
    %c0_i32_0 = arith.constant 0 : i32
    %2 = arith.cmpi ne, %1, %c0_i32_0 : i32
    scf.if %2 {
      %cst = arith.constant 0.000000e+00 : f32
      %15 = vector.broadcast %cst : f32 to vector<128x128xf32>
      %c0 = arith.constant 0 : index
      %c0_6 = arith.constant 0 : index
      %16 = vector.load %arg6[%c0, %c0_6] : memref<128x128xf32, #tpu.memory_space<vmem>>, vector<128x128xf32>
      tpu.vector_store %arg6[%c0, %c0_6], %15 {strides = array<i32>} : memref<128x128xf32, #tpu.memory_space<vmem>>, vector<128x128xf32>,
      %cst_7 = arith.constant 0.000000e+00 : f32
      %17 = vector.broadcast %cst_7 : f32 to vector<128x1xf32>
      %c0_8 = arith.constant 0 : index
      %c0_9 = arith.constant 0 : index
      %18 = vector.load %arg9[%c0_8, %c0_9] : memref<128x1xf32, #tpu.memory_space<vmem>>, vector<128x1xf32>
      tpu.vector_store %arg9[%c0_8, %c0_9], %17 {strides = array<i32>} : memref<128x1xf32, #tpu.memory_space<vmem>>, vector<128x1xf32>,
      %cst_10 = arith.constant 0.000000e+00 : f32
      %19 = vector.broadcast %cst_10 : f32 to vector<128x1xf32>
      %c0_11 = arith.constant 0 : index
      %c0_12 = arith.constant 0 : index
      %20 = vector.load %arg10[%c0_11, %c0_12] : memref<128x1xf32, #tpu.memory_space<vmem>>, vector<128x1xf32>
      tpu.vector_store %arg10[%c0_11, %c0_12], %19 {strides = array<i32>} : memref<128x1xf32, #tpu.memory_space<vmem>>, vector<128x1xf32>,
    } else {
    }
    %c4_i32 = arith.constant 4 : i32
    %3 = arith.cmpi slt, %arg1, %c4_i32 : i32
    %4 = arith.extui %3 : i1 to i32
    %c0_i32_1 = arith.constant 0 : i32
    %5 = arith.cmpi ne, %4, %c0_i32_1 : i32
    scf.if %5 {
      %c0 = arith.constant 0 : index
      %c0_6 = arith.constant 0 : index
      %15 = vector.load %arg2[%c0, %c0_6] : memref<128x128xbf16, #tpu.memory_space<vmem>>, vector<128x128xbf16>
      %c0_7 = arith.constant 0 : index
      %c0_8 = arith.constant 0 : index
      %16 = vector.load %arg3[%c0_7, %c0_8] : memref<128x256xbf16, #tpu.memory_space<vmem>>, vector<128x256xbf16>
      %cst = arith.constant dense<0.000000e+00> : vector<128x256xf32>
      %17 = tpu.matmul %15, %16, %cst {dimension_numbers = #tpu.dot_dimension_numbers<[1], [0], [0], [1], [0, 0, 1, 1], [], []>} : vector<128x128xbf16>, vector<128x256xbf16>, vector<128x256xf32> -> vector<128x256xf32>
      %18 = vector.extract_strided_slice %17 {offsets = [0, 0], sizes = [128, 128], strides = [1, 1]} : vector<128x256xf32> to vector<128x128xf32>
      %19 = arith.truncf %18 : vector<128x128xf32> to vector<128x128xbf16>
      %20 = arith.index_cast %arg1 : i32 to index
      %c0_9 = arith.constant 0 : index
      %c0_10 = arith.constant 0 : index
      %21 = vector.load %arg7[%20, %c0_9, %c0_10] : memref<4x128x128xbf16, #tpu.memory_space<vmem>>, vector<1x128x128xbf16>
      %22 = vector.shape_cast %21 : vector<1x128x128xbf16> to vector<128x128xbf16>
      %23 = vector.shape_cast %19 : vector<128x128xbf16> to vector<1x128x128xbf16>
      tpu.vector_store %arg7[%20, %c0_9, %c0_10], %23 {strides = array<i32>} : memref<4x128x128xbf16, #tpu.memory_space<vmem>>, vector<1x128x128xbf16>,
      %24 = vector.extract_strided_slice %17 {offsets = [0, 128], sizes = [128, 128], strides = [1, 1]} : vector<128x256xf32> to vector<128x128xf32>
      %25 = arith.truncf %24 : vector<128x128xf32> to vector<128x128xbf16>
      %26 = arith.index_cast %arg1 : i32 to index
      %c0_11 = arith.constant 0 : index
      %c0_12 = arith.constant 0 : index
      %27 = vector.load %arg8[%26, %c0_11, %c0_12] : memref<4x128x128xbf16, #tpu.memory_space<vmem>>, vector<1x128x128xbf16>
      %28 = vector.shape_cast %27 : vector<1x128x128xbf16> to vector<128x128xbf16>
      %29 = vector.shape_cast %25 : vector<128x128xbf16> to vector<1x128x128xbf16>
      tpu.vector_store %arg8[%26, %c0_11, %c0_12], %29 {strides = array<i32>} : memref<4x128x128xbf16, #tpu.memory_space<vmem>>, vector<1x128x128xbf16>,
      %c0_13 = arith.constant 0 : index
      %c0_14 = arith.constant 0 : index
      %30 = vector.load %arg9[%c0_13, %c0_14] : memref<128x1xf32, #tpu.memory_space<vmem>>, vector<128x1xf32>
      %cst_15 = arith.constant dense<0.000000e+00> : vector<128xf32>
      %31 = vector.multi_reduction <add>, %18, %cst_15 [1] : vector<128x128xf32> to vector<128xf32>
      %32 = vector.shape_cast %31 : vector<128xf32> to vector<128x1xf32>
      %33 = arith.addf %30, %32 : vector<128x1xf32>
      %c0_16 = arith.constant 0 : index
      %c0_17 = arith.constant 0 : index
      %34 = vector.load %arg9[%c0_16, %c0_17] : memref<128x1xf32, #tpu.memory_space<vmem>>, vector<128x1xf32>
      tpu.vector_store %arg9[%c0_16, %c0_17], %33 {strides = array<i32>} : memref<128x1xf32, #tpu.memory_space<vmem>>, vector<128x1xf32>,
      %c0_18 = arith.constant 0 : index
      %c0_19 = arith.constant 0 : index
      %35 = vector.load %arg10[%c0_18, %c0_19] : memref<128x1xf32, #tpu.memory_space<vmem>>, vector<128x1xf32>
      %36 = arith.mulf %18, %18 : vector<128x128xf32>
      %cst_20 = arith.constant dense<0.000000e+00> : vector<128xf32>
      %37 = vector.multi_reduction <add>, %36, %cst_20 [1] : vector<128x128xf32> to vector<128xf32>
      %38 = vector.shape_cast %37 : vector<128xf32> to vector<128x1xf32>
      %39 = arith.addf %35, %38 : vector<128x1xf32>
      %c0_21 = arith.constant 0 : index
      %c0_22 = arith.constant 0 : index
      %40 = vector.load %arg10[%c0_21, %c0_22] : memref<128x1xf32, #tpu.memory_space<vmem>>, vector<128x1xf32>
      tpu.vector_store %arg10[%c0_21, %c0_22], %39 {strides = array<i32>} : memref<128x1xf32, #tpu.memory_space<vmem>>, vector<128x1xf32>,
    } else {
    }
    %c3_i32 = arith.constant 3 : i32
    %6 = arith.cmpi eq, %arg1, %c3_i32 : i32
    %7 = arith.extui %6 : i1 to i32
    %c0_i32_2 = arith.constant 0 : i32
    %8 = arith.cmpi ne, %7, %c0_i32_2 : i32
    scf.if %8 {
      %c0 = arith.constant 0 : index
      %c0_6 = arith.constant 0 : index
      %15 = vector.load %arg9[%c0, %c0_6] : memref<128x1xf32, #tpu.memory_space<vmem>>, vector<128x1xf32>
      %cst = arith.constant 0.001953125 : f32
      %16 = vector.broadcast %cst : f32 to vector<128x1xf32>
      %17 = arith.mulf %15, %16 : vector<128x1xf32>
      %c0_7 = arith.constant 0 : index
      %c0_8 = arith.constant 0 : index
      %18 = vector.load %arg10[%c0_7, %c0_8] : memref<128x1xf32, #tpu.memory_space<vmem>>, vector<128x1xf32>
      %cst_9 = arith.constant 0.001953125 : f32
      %19 = vector.broadcast %cst_9 : f32 to vector<128x1xf32>
      %20 = arith.mulf %18, %19 : vector<128x1xf32>
      %21 = arith.mulf %17, %17 : vector<128x1xf32>
      %22 = arith.subf %20, %21 : vector<128x1xf32>
      %cst_10 = arith.constant 0.000000e+00 : f32
      %23 = vector.broadcast %cst_10 : f32 to vector<128x1xf32>
      %24 = arith.maximumf %22, %23 : vector<128x1xf32>
      %25 = math.sqrt %24 : vector<128x1xf32>
      %cst_11 = arith.constant 1.64485359 : f32
      %26 = vector.broadcast %cst_11 : f32 to vector<128x1xf32>
      %27 = arith.mulf %25, %26 : vector<128x1xf32>
      %28 = arith.addf %17, %27 : vector<128x1xf32>
      %c0_12 = arith.constant 0 : index
      %c0_13 = arith.constant 0 : index
      %29 = vector.load %arg11[%c0_12, %c0_13] : memref<128x1xf32, #tpu.memory_space<vmem>>, vector<128x1xf32>
      tpu.vector_store %arg11[%c0_12, %c0_13], %28 {strides = array<i32>} : memref<128x1xf32, #tpu.memory_space<vmem>>, vector<128x1xf32>,
    } else {
    }
    %c4_i32_3 = arith.constant 4 : i32
    %9 = arith.cmpi sge, %arg1, %c4_i32_3 : i32
    %10 = arith.extui %9 : i1 to i32
    %c0_i32_4 = arith.constant 0 : i32
    %11 = arith.cmpi ne, %10, %c0_i32_4 : i32
    scf.if %11 {
      %c4_i32_6 = arith.constant 4 : i32
      %15 = arith.subi %arg1, %c4_i32_6 : i32
      %16 = arith.index_cast %15 : i32 to index
      %c0 = arith.constant 0 : index
      %c0_7 = arith.constant 0 : index
      %17 = vector.load %arg7[%16, %c0, %c0_7] : memref<4x128x128xbf16, #tpu.memory_space<vmem>>, vector<1x128x128xbf16>
      %18 = vector.shape_cast %17 : vector<1x128x128xbf16> to vector<128x128xbf16>
      %19 = arith.extf %18 : vector<128x128xbf16> to vector<128x128xf32>
      %c0_8 = arith.constant 0 : index
      %c0_9 = arith.constant 0 : index
      %20 = vector.load %arg11[%c0_8, %c0_9] : memref<128x1xf32, #tpu.memory_space<vmem>>, vector<128x1xf32>
      %21 = vector.broadcast %20 : vector<128x1xf32> to vector<128x128xf32>
      %22 = arith.subf %19, %21 : vector<128x128xf32>
      %cst = arith.constant 0.000000e+00 : f32
      %23 = vector.broadcast %cst : f32 to vector<128x128xf32>
      %24 = arith.maximumf %22, %23 : vector<128x128xf32>
      %25 = arith.index_cast %15 : i32 to index
      %c0_10 = arith.constant 0 : index
      %c0_11 = arith.constant 0 : index
      %26 = vector.load %arg8[%25, %c0_10, %c0_11] : memref<4x128x128xbf16, #tpu.memory_space<vmem>>, vector<1x128x128xbf16>
      %27 = vector.shape_cast %26 : vector<1x128x128xbf16> to vector<128x128xbf16>
      %28 = arith.extf %27 : vector<128x128xbf16> to vector<128x128xf32>
      %cst_12 = arith.constant 5.000000e-01 : f32
      %29 = vector.broadcast %cst_12 : f32 to vector<128x128xf32>
      %30 = arith.mulf %29, %24 : vector<128x128xf32>
      %cst_13 = arith.constant 4.471500e-02 : f32
      %31 = vector.broadcast %cst_13 : f32 to vector<128x128xf32>
      %32 = arith.mulf %31, %24 : vector<128x128xf32>
      %33 = arith.mulf %32, %24 : vector<128x128xf32>
      %34 = arith.mulf %33, %24 : vector<128x128xf32>
      %35 = arith.addf %24, %34 : vector<128x128xf32>
      %cst_14 = arith.constant 0.797884583 : f32
      %36 = vector.broadcast %cst_14 : f32 to vector<128x128xf32>
      %37 = arith.mulf %36, %35 : vector<128x128xf32>
      %38 = math.tanh %37 : vector<128x128xf32>
      %cst_15 = arith.constant 1.000000e+00 : f32
      %39 = vector.broadcast %cst_15 : f32 to vector<128x128xf32>
      %40 = arith.addf %39, %38 : vector<128x128xf32>
      %41 = arith.mulf %30, %40 : vector<128x128xf32>
      %42 = arith.mulf %41, %28 : vector<128x128xf32>
      %c0_16 = arith.constant 0 : index
      %c0_17 = arith.constant 0 : index
      %43 = vector.load %arg6[%c0_16, %c0_17] : memref<128x128xf32, #tpu.memory_space<vmem>>, vector<128x128xf32>
      %44 = arith.truncf %42 : vector<128x128xf32> to vector<128x128xbf16>
      %c0_18 = arith.constant 0 : index
      %c0_19 = arith.constant 0 : index
      %45 = vector.load %arg4[%c0_18, %c0_19] : memref<128x128xbf16, #tpu.memory_space<vmem>>, vector<128x128xbf16>
      %cst_20 = arith.constant dense<0.000000e+00> : vector<128x128xf32>
      %46 = tpu.matmul %44, %45, %cst_20 {dimension_numbers = #tpu.dot_dimension_numbers<[1], [0], [0], [1], [0, 0, 1, 1], [], []>} : vector<128x128xbf16>, vector<128x128xbf16>, vector<128x128xf32> -> vector<128x128xf32>
      %47 = arith.addf %43, %46 : vector<128x128xf32>
      %c0_21 = arith.constant 0 : index
      %c0_22 = arith.constant 0 : index
      %48 = vector.load %arg6[%c0_21, %c0_22] : memref<128x128xf32, #tpu.memory_space<vmem>>, vector<128x128xf32>
      tpu.vector_store %arg6[%c0_21, %c0_22], %47 {strides = array<i32>} : memref<128x128xf32, #tpu.memory_space<vmem>>, vector<128x128xf32>,
    } else {
    }
    %c7_i32 = arith.constant 7 : i32
    %12 = arith.cmpi eq, %arg1, %c7_i32 : i32
    %13 = arith.extui %12 : i1 to i32
    %c0_i32_5 = arith.constant 0 : i32
    %14 = arith.cmpi ne, %13, %c0_i32_5 : i32
    scf.if %14 {
      %c0 = arith.constant 0 : index
      %c0_6 = arith.constant 0 : index
      %15 = vector.load %arg6[%c0, %c0_6] : memref<128x128xf32, #tpu.memory_space<vmem>>, vector<128x128xf32>
      %16 = arith.truncf %15 : vector<128x128xf32> to vector<128x128xbf16>
      %c0_7 = arith.constant 0 : index
      %c0_8 = arith.constant 0 : index
      %17 = vector.load %arg5[%c0_7, %c0_8] : memref<128x128xbf16, #tpu.memory_space<vmem>>, vector<128x128xbf16>
      tpu.vector_store %arg5[%c0_7, %c0_8], %16 {strides = array<i32>} : memref<128x128xbf16, #tpu.memory_space<vmem>>, vector<128x128xbf16>,
    } else {
    }
    return
  }
  func.func @transform_0(%arg0: i32, %arg1: i32) -> (i32, i32) {
    %c0_i32 = arith.constant 0 : i32
    %c0_i32_0 = arith.constant 0 : i32
    return %arg0, %c0_i32 : i32, i32
  }
  func.func @transform_1(%arg0: i32, %arg1: i32) -> (i32, i32) {
    %c3_i32 = arith.constant 3 : i32
    %0 = arith.minsi %arg1, %c3_i32 : i32
    %c0_i32 = arith.constant 0 : i32
    %c0_i32_0 = arith.constant 0 : i32
    return %c0_i32, %0 : i32, i32
  }
  func.func @transform_2(%arg0: i32, %arg1: i32) -> (i32, i32) {
    %c4_i32 = arith.constant 4 : i32
    %0 = arith.subi %arg1, %c4_i32 : i32
    %c0_i32 = arith.constant 0 : i32
    %1 = arith.maxsi %0, %c0_i32 : i32
    %c0_i32_0 = arith.constant 0 : i32
    %c0_i32_1 = arith.constant 0 : i32
    return %1, %c0_i32_0 : i32, i32
  }
  func.func @transform_3(%arg0: i32, %arg1: i32) -> (i32, i32) {
    %c0_i32 = arith.constant 0 : i32
    %c0_i32_0 = arith.constant 0 : i32
    return %arg0, %c0_i32 : i32, i32
  }
}

</mosaic_0001>

<bundles_post_ra>
// kernel: tpu_custom_call.1
= control target key start
LH: loop header
LB: loop body
LE: loop exit
PB: predicated region body
PF: predicated region fallthrough
CT: control target
= control target key end

     0   :  { %s3693_s0 = inlined_call_operand.hbm [shape: bf16[256,128], index: 0, kind: input, shape index: {}]   ;;  %s3694_s1 = inlined_call_operand.hbm [shape: bf16[128,1024], index: 1, kind: input, shape index: {}]   ;;  %s3695_s2 = inlined_call_operand.hbm [shape: bf16[512,128], index: 2, kind: input, shape index: {}]   ;;  %s3696_s3 = inlined_call_operand.hbm [shape: bf16[256,128], index: 3, kind: output, shape index: {}]  }
   0x1   :  { %3711 = sst [smem:[#allocation26_spill]] %s3693_s0 }
   0x2   :  { %3712 = sst [smem:[#allocation27_spill]] %s3694_s1 }
   0x3   :  { %3713 = sst [smem:[#allocation28_spill]] %s3695_s2 }
   0x4   :  { %3714 = sst [smem:[#allocation29_spill]] %s3696_s3 }
   0x5   :  { %8 = vsyncpa [#allocation9], 0 }
   0x6   :  { %10 = vsyncpa [#allocation9 + $0x1], 0 }
   0x7   :  { %11 = vsyncpa [#allocation12], 0 }
   0x8   :  { %13 = vsyncpa [#allocation12 + $0x1], 0 }
   0x9   :  { %14 = vsyncpa [#allocation10], 0 }
   0xa   :  { %16 = vsyncpa [#allocation10 + $0x1], 0  ;;  %s2705_s12 = smov 0   ;;  %s2707_s13 = smov 0  }
   0xb   :  { %s2709_s14 = smov 0   ;;  %s2711_s15 = smov 0  }
   0xc   :  { %s2713_s16 = smov 0   ;;  %s2715_s17 = smov 0  }
   0xd   :  { %s2717_s18 = smov 0   ;;  %s2719_s19 = smov 0  }
   0xe   :  { %s2721_s20 = smov 0   ;;  %s2723_s21 = smov 0  }
   0xf   :  { %s2725_s22 = smov 0   ;;  %s2727_s23 = smov 0  }
  0x10   :  { %s2729_s24 = smov 0   ;;  %s2731_s25 = smov 0  }
  0x11 LB: > { %3715 = sst [smem:[#allocation19_spill]] %s2649_s20  ;;  %s31_s26 = sadd.s32 1, %s2661_s23  ;;  %s2669_s25 = sphi %s2731_s25, %s22_s25   ;;  %s2665_s24 = sphi %s2729_s24, %s3766_s24   ;;  %s2661_s23 = sphi %s2727_s23, %s3776_s23   ;;  %s2657_s22 = sphi %s2725_s22, %s3765_s22   ;;  %s2653_s21 = sphi %s2723_s21, %s3775_s21   ;;  %s2649_s20 = sphi %s2721_s20, %s3764_s20   ;;  %s2645_s19 = sphi %s2719_s19, %s3774_s19   ;;  %s2641_s18 = sphi %s2717_s18, %s3773_s18   ;;  %s2637_s17 = sphi %s2715_s17, %s3772_s17   ;;  %s2633_s16 = sphi %s2713_s16, %s3771_s16   ;;  %s2629_s15 = sphi %s2711_s15, %s3770_s15   ;;  %s2625_s14 = sphi %s2709_s14, %s3769_s14   ;;  %s2621_s13 = sphi %s2707_s13, %s3768_s13   ;;  %s2617_s12 = sphi %s2705_s12, %s3767_s12  }
  0x12   : > { %3716 = sst [smem:[#allocation20_spill]] %s2653_s21  ;;  %p3700_p0 = scmp.eq.s32.totalorder %s2669_s25, 0 }
  0x13   : > { %3717 = sst [smem:[#allocation21_spill]] %s2657_s22  ;;  %p2777_p1 = scmp.ge.s32.totalorder %s31_s26, 8 }
  0x14   : > { %3718 = sst [smem:[#allocation22_spill]] %s2665_s24  ;;  %p64_p2 = scmp.lt.s32.totalorder %s2661_s23, 3 }
  0x15   : > { %s71_s28 = sadd.s32 1, %s2637_s17  ;;  %p78_p3 = scmp.ne.s32.totalorder %s2637_s17, %s2633_s16 }
  0x16   : > { %s3778_s26 = smov (%p2777_p1, %s31_s26), 0  ;;  %p3699_p7 = scmp.lt.s32.totalorder %s2669_s25, 16 }
  0x17   : > { %s65_s29 = scalar_select %p64_p2, %s2661_s23, 3 }
  0x18   : > { %p66_p4 = scmp.lt.s32.totalorder %s3778_s26, 3  ;;  %p2793_p5 = por %p78_p3, %p3700_p0 }
  0x19   : > { %s187_s5 = sand.u32 1, %s2669_s25   ;;  %s189_s7 = sand.u32 1, %s2637_s17  }
  0x1a   : > { %s67_s4 = scalar_select %p66_p4, %s3778_s26, 3 }
  0x1b   : > { %s1945_s8 = sshll.u32 %s189_s7, 7  ;;  %s2023_s9 = sshll.u32 %s65_s29, 7 }
  0x1c   : > { %s68_s6 = ssub.s32 %s65_s29, %s67_s4  ;;  %s3722_s1 = sld [smem:[#allocation27_spill]] }
  0x1d   : > { %p69_p8 = scmp.eq.s32.totalorder %s68_s6, 0  ;;  %s191_s21 = scalar_lea.vmem [#allocation11], %s1945_s8 }
  0x1e   : > { %s200_s2 = sshll.u32 %s191_s21, 4  ;;  %p2815_p9 = pnand %p3699_p7, %p2793_p5  ;;  %s2819_s2 = int_to_ptr.vmem [resolvable:$true] %s200_s2 }
  0x1f   : > { %s2804_s10 = scalar_select %p69_p8, %s2637_s17, %s71_s28  }
  0x20   : > { %s2822_s3 = scalar_lea.sflag [#allocation12], %s187_s5  ;;  %p2427_p12 = pneg %p2815_p9 }
  0x21   : > { %3721 = sst [smem:[#allocation23_spill]] %s2804_s10 }
  0x22   : > { %s2809_s22 = scalar_lea.hbm %s3722_s1, %s2023_s9  ;;  %s2430_s30 = scalar_lea.hbm %s3722_s1, 8192 }
  0x23   : > { %s2425_s28 = scalar_lea.hbm %s2809_s22, 2048  ;;  %p2431_p3 = scmp.lt.u32.totalorder %s2809_s22, %s3722_s1 }
  0x24   : > { %p2426_p11 = scmp.ne.s32.totalorder %s2809_s22, %s2425_s28  ;;  %p2432_p4 = scmp.lt.u32.totalorder %s2430_s30, %s2425_s28 }
  0x25   : > { %p2434_p8 = scmp.lt.u32.totalorder %s2425_s28, %s2809_s22 }
  0x26   : > { %p2428_p13 = pnand %p2427_p12, %p2426_p11  ;;  %p2433_p5 = por %p2432_p4, %p2431_p3 }
  0x28   : > { %p2429_p2 = pneg %p2428_p13  ;;  %p2435_p7 = por %p2434_p8, %p2433_p5 }
  0x2a   : > { %p2436_p6 = pnand %p2435_p7, %p2429_p2 }
  0x2c   : > { %2439 = shalt.err (!%p2436_p6)
}
  0x2d   : > { %s2440_s5 = scalar_lea.vmem %s2819_s2, 2048  ;;  %s2671_s8 = smov [#allocation11]  }
  0x2e   : > { %p2441_p11 = scmp.ne.s32.totalorder %s2819_s2, %s2440_s5  ;;  %s2445_s9 = sshll.u32 %s2671_s8, 4  ;;  %s2446_s9 = int_to_ptr.vmem [resolvable:$false] %s2445_s9 }
  0x2f   : > { %s2447_s11 = scalar_lea.vmem %s2446_s9, 4096  ;;  %p2448_p10 = scmp.lt.s32.totalorder %s2819_s2, %s2446_s9 }
  0x30   : > { %p2443_p13 = pnand %p2441_p11, %p2427_p12  ;;  %p2449_p3 = scmp.lt.s32.totalorder %s2447_s11, %s2440_s5 }
  0x32   : > { %p2444_p0 = pneg %p2443_p13  ;;  %p2450_p4 = por %p2449_p3, %p2448_p10 }
  0x34   : > { %p2451_p5 = pnand %p2450_p4, %p2444_p0 }
  0x36   : > { %2454 = shalt.err (!%p2451_p5)
}
  0x37   : > { %s2672_s28 = smov 512   ;;  %s2673_s21 = smov 128  }
  0x38   : > { %s2674_s29 = smov 8   ;;  %p232_p0 = scmp.lt.s32.totalorder %s2669_s25, 17 }
  0x39   : > { %2187 = dma.hbm_to_vmem [thread:$0]  (!%p2815_p9), %s2809_s22, 2048, %s2819_s2, %s2822_s3, %s2672_s28, %s2673_s21, %s2674_s29  }
  0x3a   : > { %p3724_p6 = scmp.ge.s32.totalorder %s2669_s25, 1  ;;  %s2858_s6 = sadd.s32 4294967295, %s2669_s25  }
  0x3b   : > { %s1937_s7 = sadd.s32 4294967294, %s2669_s25   ;;  %s34_s4 = sadd.s32 1, %s2665_s24 }
  0x3c   : > { %p2853_p7 = pnand %p3724_p6, %p232_p0  ;;  %s41_s5 = sadd.s32 1, %s2649_s20 }
  0x3d   : > { %s3780_s4 = smov (!%p2777_p1, %s34_s4), %s2665_s24  ;;  %p48_p9 = scmp.ne.s32.totalorder %s2649_s20, %s2645_s19 }
  0x3e   : > { %p54_p10 = scmp.ne.s32.totalorder %s2645_s19, %s2641_s18  ;;  %p36_p12 = scmp.ge.s32.totalorder %s3780_s4, 2 }
  0x3f   : > { %p3704_p2 = scmp.eq.s32.totalorder %s2858_s6, 0  ;;  %p3726_p8 = scmp.eq.s32.totalorder %s2669_s25, 0 }
  0x40   : > { %p140_p13 = scmp.eq.s32.totalorder %s2858_s6, 15  ;;  %s3782_s4 = smov (%p36_p12, %s3780_s4), 0 }
  0x41   : > { %p2873_p11 = por %p3726_p8, %p48_p9  ;;  %3728 = sst [smem:[#allocation24_spill]] %s3782_s4 }
  0x42   : > { %p2885_p1 = por %p3704_p2, %p54_p10  ;;  %p3730_p3 = scmp.ne.s32.totalorder %s2633_s16, %s2629_s15 }
  0x43   : > { %s38_s8 = ssub.s32 %s2665_s24, %s3782_s4  ;;  %p2900_p5 = por %p140_p13, %p48_p9 }
  0x44   : > { %s3729_s22 = scalar_select %p2885_p1, 1, 0 }
  0x45   : > { %p2894_p4 = por %p3730_p3, %p3704_p2  ;;  %p39_p0 = scmp.eq.s32.totalorder %s38_s8, 0 }
  0x46   : > { %s3732_s9 = scalar_select %p2900_p5, 1, 0 }
  0x47   : > { %s3731_s27 = scalar_select %p2894_p4, 1, 0 }
  0x48   : > { %p146_p6 = scmp.eq.s32.totalorder %s1937_s7, 15  ;;  %s166_s11 = sand.u32 1, %s2649_s20  }
  0x49   : > { %s2022_s28 = sshll.u32 %s2665_s24, 10  ;;  %s1942_s15 = sshll.u32 %s166_s11, 6 }
  0x4a   : > { %s2907_s21 = scalar_select %p39_p0, %s2649_s20, %s41_s5  }
  0x4b   : > { %p2912_p12 = por %p146_p6, %p54_p10  ;;  %s3735_s0 = sld [smem:[#allocation26_spill]] }
  0x4c   : > { %3733 = sst [smem:[#allocation25_spill]] %s2907_s21  ;;  %p3736_p9 = scmp.lt.s32.totalorder %s2669_s25, 16 }
  0x4d   : > { %s3734_s29 = scalar_select %p2912_p12, 1, 0 }
  0x4e   : > { %p2925_p8 = pnand %p3736_p9, %p2873_p11  ;;  %s170_s5 = scalar_lea.vmem [#allocation8], %s1942_s15 }
  0x4f   : > { %s177_s8 = sshll.u32 %s170_s5, 4  ;;  %s2931_s24 = scalar_lea.sflag [#allocation9], %s166_s11  ;;  %s2929_s8 = int_to_ptr.vmem [resolvable:$true] %s177_s8 }
  0x50   : > { %p2457_p13 = pneg %p2925_p8 }
  0x51   : > { %s2919_s4 = scalar_lea.hbm %s3735_s0, %s2022_s28  ;;  %s2460_s28 = scalar_lea.hbm %s3735_s0, 2048 }
  0x52   : > { %s2455_s1 = scalar_lea.hbm %s2919_s4, 1024  ;;  %p2461_p11 = scmp.lt.u32.totalorder %s2919_s4, %s3735_s0 }
  0x53   : > { %p2456_p10 = scmp.ne.s32.totalorder %s2919_s4, %s2455_s1  ;;  %p2462_p6 = scmp.lt.u32.totalorder %s2460_s28, %s2455_s1 }
  0x54   : > { %p2464_p2 = scmp.lt.u32.totalorder %s2455_s1, %s2919_s4 }
  0x55   : > { %p2458_p3 = pnand %p2457_p13, %p2456_p10  ;;  %p2463_p9 = por %p2462_p6, %p2461_p11 }
  0x57   : > { %p2459_p0 = pneg %p2458_p3  ;;  %p2465_p12 = por %p2464_p2, %p2463_p9 }
  0x59   : > { %p2466_p5 = pnand %p2465_p12, %p2459_p0 }
  0x5b   : > { %2469 = shalt.err (!%p2466_p5)
}
  0x5c   : > { %s2470_s11 = scalar_lea.vmem %s2929_s8, 1024  ;;  %s2675_s15 = smov [#allocation8]  }
  0x5d   : > { %p2471_p10 = scmp.ne.s32.totalorder %s2929_s8, %s2470_s11  ;;  %s2475_s5 = sshll.u32 %s2675_s15, 4  ;;  %s2476_s5 = int_to_ptr.vmem [resolvable:$false] %s2475_s5 }
  0x5e   : > { %s2477_s20 = scalar_lea.vmem %s2476_s5, 2048  ;;  %p2478_p1 = scmp.lt.s32.totalorder %s2929_s8, %s2476_s5 }
  0x5f   : > { %p2473_p3 = pnand %p2471_p10, %p2457_p13  ;;  %p2479_p11 = scmp.lt.s32.totalorder %s2477_s20, %s2470_s11 }
  0x61   : > { %p2474_p4 = pneg %p2473_p3  ;;  %p2480_p6 = por %p2479_p11, %p2478_p1 }
  0x63   : > { %p2481_p2 = pnand %p2480_p6, %p2474_p4 }
  0x65   : > { %2484 = shalt.err (!%p2481_p2)
}
  0x66   : > { %s3708_s21 = smov 64   ;;  %s3709_s1 = smov 4  }
  0x67   : > { %2184 = dma.hbm_to_vmem [thread:$0]  (!%p2925_p8), %s2919_s4, 1024, %s2929_s8, %s2931_s24, %s3708_s21, %s3708_s21, %s3709_s1  }
  0x68   : > { %s1938_s10 = sadd.s32 4294967292, %s2661_s23  ;;  %s1939_s2 = sadd.s32 4294967292, %s3778_s26 }
  0x69   : > { %p95_p1 = scmp.gt.s32.totalorder %s1938_s10, 0  ;;  %p98_p4 = scmp.gt.s32.totalorder %s1939_s2, 0 }
  0x6a   : > { %s103_s28 = sadd.s32 1, %s2625_s14  ;;  %p110_p5 = scmp.ne.s32.totalorder %s2625_s14, %s2621_s13 }
  0x6b   : > { %s3784_s10 = smov (!%p95_p1, %s1938_s10), 0  ;;  %s3786_s2 = smov (!%p98_p4, %s1939_s2), 0 }
  0x6c   : > { %p116_p12 = scmp.ne.s32.totalorder %s2621_s13, %s2617_s12  ;;  %s100_s11 = ssub.s32 %s3784_s10, %s3786_s2 }
  0x6d   : > { %s212_s15 = sand.u32 1, %s2625_s14   ;;  %p101_p13 = scmp.eq.s32.totalorder %s100_s11, 0 }
  0x6e   : > { %p3738_p0 = scmp.eq.s32.totalorder %s2669_s25, 0  ;;  %p3739_p10 = scmp.eq.s32.totalorder %s2858_s6, 0 }
  0x6f   : > { %s1948_s24 = sshll.u32 %s212_s15, 6  ;;  %s2024_s8 = sshll.u32 %s3784_s10, 10 }
  0x70   : > { %p112_p9 = por %p110_p5, %p3738_p0  ;;  %p2974_p3 = por %p116_p12, %p3739_p10 }
  0x71   : > { %s2979_s4 = scalar_select %p101_p13, %s2625_s14, %s103_s28  }
  0x72   : > { %s3740_s7 = scalar_select %p2974_p3, 1, 0 }
  0x73   : > { %s3741_s21 = sld [smem:[#allocation28_spill]]  ;;  %s214_s12 = scalar_lea.vmem [#allocation13], %s1948_s24 }
  0x74   : > { %s224_s2 = sshll.u32 %s214_s12, 4  ;;  %p3743_p8 = scmp.lt.s32.totalorder %s2669_s25, 16  ;;  %s2986_s2 = int_to_ptr.vmem [resolvable:$true] %s224_s2 }
  0x76   : > { %p2990_p11 = pnand %p3743_p8, %p112_p9 }
  0x78   : > { %p2487_p2 = pneg %p2990_p11 }
  0x79   : > { %s3742_s1 = smov %s3741_s21  ;;  %s2984_s0 = scalar_lea.hbm %s3741_s21, %s2024_s8 }
  0x7a   : > { %s2485_s10 = scalar_lea.hbm %s2984_s0, 1024  ;;  %s2490_s15 = scalar_lea.hbm %s3742_s1, 4096 }
  0x7b   : > { %p2486_p6 = scmp.ne.s32.totalorder %s2984_s0, %s2485_s10  ;;  %p2491_p5 = scmp.lt.u32.totalorder %s2984_s0, %s3742_s1 }
  0x7c   : > { %p2492_p12 = scmp.lt.u32.totalorder %s2490_s15, %s2485_s10  ;;  %p2494_p0 = scmp.lt.u32.totalorder %s2485_s10, %s2984_s0 }
  0x7d   : > { %p2488_p1 = pnand %p2487_p2, %p2486_p6 }
  0x7e   : > { %p2493_p13 = por %p2492_p12, %p2491_p5 }
  0x7f   : > { %p2489_p4 = pneg %p2488_p1 }
  0x80   : > { %p2495_p9 = por %p2494_p0, %p2493_p13 }
  0x82   : > { %p2496_p10 = pnand %p2495_p9, %p2489_p4 }
  0x84   : > { %2499 = shalt.err (!%p2496_p10)
}
  0x85   : > { %s2500_s5 = scalar_lea.vmem %s2986_s2, 1024  ;;  %s2678_s20 = smov [#allocation13]  }
  0x86   : > { %p2501_p8 = scmp.ne.s32.totalorder %s2986_s2, %s2500_s5  ;;  %s2505_s12 = sshll.u32 %s2678_s20, 4  ;;  %s2506_s12 = int_to_ptr.vmem [resolvable:$false] %s2505_s12 }
  0x87   : > { %s2507_s21 = scalar_lea.vmem %s2506_s12, 2048  ;;  %p2508_p3 = scmp.lt.s32.totalorder %s2986_s2, %s2506_s12 }
  0x88   : > { %p2503_p6 = pnand %p2501_p8, %p2487_p2  ;;  %p2509_p5 = scmp.lt.s32.totalorder %s2507_s21, %s2500_s5 }
  0x8a   : > { %p2504_p1 = pneg %p2503_p6  ;;  %p2510_p12 = por %p2509_p5, %p2508_p3 }
  0x8c   : > { %p2511_p13 = pnand %p2510_p12, %p2504_p1 }
  0x8e   : > { %2514 = shalt.err (!%p2511_p13)
}
  0x8f   : > { %s3745_s10 = smov 4   ;;  %s3746_s28 = smov 64  }
  0x90   : > { %2190 = dma.hbm_to_vmem [thread:$0]  (!%p2990_p11), %s2984_s0, 1024, %s2986_s2, %s2822_s3, %s3746_s28, %s3746_s28, %s3745_s10  }
  0x91   : > { %236 = sbr.rel (%p2853_p7) target bundleno = 1195 (0x4ab), region = 32  ;;  %s3026_s15 = sand.u32 (!%p2853_p7), 1, %s2645_s19  }
  0x92   : > { %s1953_s24 = sshll.u32 (!%p2853_p7), %s3026_s15, 6  ;;  %s239_s8 = scalar_lea.sflag (!%p2853_p7), [#allocation9], %s3026_s15 }
  0x93   : > { %s3030_s5 = scalar_lea.vmem (!%p2853_p7), [#allocation8], %s1953_s24  ;;  %p3747_p3 = scmp.ne.s32.totalorder (!%p2853_p7), %s3729_s22, 0 }
  0x98   : > { %2600 = dma.done.wait (%p3747_p3), %s239_s8, 1024  }
  0x99   : > { %2602 = vsyncadd (%p3747_p3), %s239_s8, 4294966272  ;;  %s247_s0 = sand.u32 1, %s2858_s6   ;;  %s249_s3 = sand.u32 1, %s2633_s16  }
  0x9a   : > { %s1954_s30 = sshll.u32 %s249_s3, 7  ;;  %s248_s2 = scalar_lea.sflag [#allocation12], %s247_s0 }
  0x9b   : > { %s3038_s11 = scalar_lea.vmem [#allocation11], %s1954_s30  ;;  %p3748_p7 = scmp.ne.s32.totalorder %s3731_s27, 0 }
  0x9d   : > { %2604 = dma.done.wait (%p3748_p7), %s248_s2, 2048  }
  0x9e   : > { %2606 = vsyncadd (%p3748_p7), %s248_s2, 4294965248  ;;  %s258_s20 = sand.u32 1, %s2621_s13   ;;  %p3749_p11 = scmp.ne.s32.totalorder %s3740_s7, 0 }
  0x9f   : > { %s1955_s12 = sshll.u32 %s258_s20, 6 }
  0xa0   : > { %s3045_s22 = scalar_lea.vmem [#allocation13], %s1955_s12 }
  0xa1   : > { %2608 = dma.done.wait (%p3749_p11), %s248_s2, 1024  }
  0xa2   : > { %2610 = vsyncadd (%p3749_p11), %s248_s2, 4294966272  ;;  %s3051_s6 = scalar_lea.vmem [#allocation14], %s1953_s24  ;;  %s3750_s21 = sld [smem:[#allocation20_spill]] }
  0xa8   : > { %p1957_p2 = scmp.ne.s32.totalorder %s3750_s21, 0 }
  0xa9   : > { %vm323_vm0 = vcmask (!%p1957_p2), 7168   ;;  %v2679_v0 = vmov (!%p1957_p2), 0.0  }
  0xaa   : > { %306 = sbr.rel (%p1957_p2) target bundleno = 194 (0xc2), region = 48  ;;  %307 = vst [vmem:[#allocation2] sm:$0xff] (!%p1957_p2), %v2679_v0  ;;  %308 = vst [vmem:[#allocation2 + $0x8] sm:$0xff] (!%p1957_p2), %v2679_v0 }
  0xab   : > { %309 = vst [vmem:[#allocation2 + $0x10] sm:$0xff] (!%p1957_p2), %v2679_v0  ;;  %310 = vst [vmem:[#allocation2 + $0x18] sm:$0xff] (!%p1957_p2), %v2679_v0 }
  0xac   : > { %311 = vst [vmem:[#allocation2 + $0x20] sm:$0xff] (!%p1957_p2), %v2679_v0  ;;  %312 = vst [vmem:[#allocation2 + $0x28] sm:$0xff] (!%p1957_p2), %v2679_v0 }
  0xad   : > { %313 = vst [vmem:[#allocation2 + $0x30] sm:$0xff] (!%p1957_p2), %v2679_v0  ;;  %314 = vst [vmem:[#allocation2 + $0x38] sm:$0xff] (!%p1957_p2), %v2679_v0 }
  0xae   : > { %315 = vst [vmem:[#allocation2 + $0x40] sm:$0xff] (!%p1957_p2), %v2679_v0  ;;  %316 = vst [vmem:[#allocation2 + $0x48] sm:$0xff] (!%p1957_p2), %v2679_v0 }
  0xaf   : > { %317 = vst [vmem:[#allocation2 + $0x50] sm:$0xff] (!%p1957_p2), %v2679_v0  ;;  %318 = vst [vmem:[#allocation2 + $0x58] sm:$0xff] (!%p1957_p2), %v2679_v0 }
  0xb0   : > { %319 = vst [vmem:[#allocation2 + $0x60] sm:$0xff] (!%p1957_p2), %v2679_v0  ;;  %320 = vst [vmem:[#allocation2 + $0x68] sm:$0xff] (!%p1957_p2), %v2679_v0 }
  0xb1   : > { %321 = vst [vmem:[#allocation2 + $0x70] sm:$0xff] %v2679_v0  ;;  %322 = vst [vmem:[#allocation2 + $0x78] sm:$0xff] %v2679_v0 }
  0xb2   : > { %324 = vst.msk [vmem:[#allocation5] sm:$0xff] %vm323_vm0, %v2679_v0  ;;  %325 = vst.msk [vmem:[#allocation5 + $0x8] sm:$0xff] %vm323_vm0, %v2679_v0 }
  0xb3   : > { %326 = vst.msk [vmem:[#allocation5 + $0x10] sm:$0xff] %vm323_vm0, %v2679_v0  ;;  %327 = vst.msk [vmem:[#allocation5 + $0x18] sm:$0xff] %vm323_vm0, %v2679_v0 }
  0xb4   : > { %328 = vst.msk [vmem:[#allocation5 + $0x20] sm:$0xff] %vm323_vm0, %v2679_v0  ;;  %329 = vst.msk [vmem:[#allocation5 + $0x28] sm:$0xff] %vm323_vm0, %v2679_v0 }
  0xb5   : > { %330 = vst.msk [vmem:[#allocation5 + $0x30] sm:$0xff] %vm323_vm0, %v2679_v0  ;;  %331 = vst.msk [vmem:[#allocation5 + $0x38] sm:$0xff] %vm323_vm0, %v2679_v0 }
  0xb6   : > { %332 = vst.msk [vmem:[#allocation5 + $0x40] sm:$0xff] %vm323_vm0, %v2679_v0  ;;  %333 = vst.msk [vmem:[#allocation5 + $0x48] sm:$0xff] %vm323_vm0, %v2679_v0 }
  0xb7   : > { %334 = vst.msk [vmem:[#allocation5 + $0x50] sm:$0xff] %vm323_vm0, %v2679_v0  ;;  %335 = vst.msk [vmem:[#allocation5 + $0x58] sm:$0xff] %vm323_vm0, %v2679_v0 }
  0xb8   : > { %336 = vst.msk [vmem:[#allocation5 + $0x60] sm:$0xff] %vm323_vm0, %v2679_v0  ;;  %337 = vst.msk [vmem:[#allocation5 + $0x68] sm:$0xff] %vm323_vm0, %v2679_v0 }
  0xb9   : > { %338 = vst.msk [vmem:[#allocation5 + $0x70] sm:$0xff] %vm323_vm0, %v2679_v0  ;;  %339 = vst.msk [vmem:[#allocation5 + $0x78] sm:$0xff] %vm323_vm0, %v2679_v0 }
  0xba   : > { %340 = vst.msk [vmem:[#allocation6] sm:$0xff] %vm323_vm0, %v2679_v0  ;;  %341 = vst.msk [vmem:[#allocation6 + $0x8] sm:$0xff] %vm323_vm0, %v2679_v0 }
  0xbb   : > { %342 = vst.msk [vmem:[#allocation6 + $0x10] sm:$0xff] %vm323_vm0, %v2679_v0  ;;  %343 = vst.msk [vmem:[#allocation6 + $0x18] sm:$0xff] %vm323_vm0, %v2679_v0 }
  0xbc   : > { %344 = vst.msk [vmem:[#allocation6 + $0x20] sm:$0xff] %vm323_vm0, %v2679_v0  ;;  %345 = vst.msk [vmem:[#allocation6 + $0x28] sm:$0xff] %vm323_vm0, %v2679_v0 }
  0xbd   : > { %346 = vst.msk [vmem:[#allocation6 + $0x30] sm:$0xff] %vm323_vm0, %v2679_v0  ;;  %347 = vst.msk [vmem:[#allocation6 + $0x38] sm:$0xff] %vm323_vm0, %v2679_v0 }
  0xbe   : > { %348 = vst.msk [vmem:[#allocation6 + $0x40] sm:$0xff] %vm323_vm0, %v2679_v0  ;;  %349 = vst.msk [vmem:[#allocation6 + $0x48] sm:$0xff] %vm323_vm0, %v2679_v0 }
  0xbf   : > { %350 = vst.msk [vmem:[#allocation6 + $0x50] sm:$0xff] %vm323_vm0, %v2679_v0  ;;  %351 = vst.msk [vmem:[#allocation6 + $0x58] sm:$0xff] %vm323_vm0, %v2679_v0 }
  0xc0   : > { %352 = vst.msk [vmem:[#allocation6 + $0x60] sm:$0xff] %vm323_vm0, %v2679_v0  ;;  %353 = vst.msk [vmem:[#allocation6 + $0x68] sm:$0xff] %vm323_vm0, %v2679_v0 }
  0xc1   : > { %354 = vst.msk [vmem:[#allocation6 + $0x70] sm:$0xff] %vm323_vm0, %v2679_v0  ;;  %355 = vst.msk [vmem:[#allocation6 + $0x78] sm:$0xff] %vm323_vm0, %v2679_v0 }
  0xc2 PF: > { %s3751_s27 = sld [smem:[#allocation20_spill]] }
  0xc8   : > { %p1958_p4 = scmp.ge.s32.totalorder %s3751_s27, 4 }
  0xc9   : > { %v2319_v1 = vld [vmem:[%s3038_s11 + $0x4] ss:$8 sps:$4 sm:$0xff] (!%p1958_p4)   ;;  %v2321_v2 = vld [vmem:[%s3038_s11] ss:$8 sps:$4 sm:$0xff] (!%p1958_p4)   ;;  %v2680_v3 = vmov (!%p1958_p4), 0   ;;  %s3752_s7 = sld [smem:[#allocation20_spill]] (!%p1958_p4) }
  0xca   : > { %359 = sbr.rel (%p1958_p4) target bundleno = 654 (0x28e), region = 52  ;;  %552 = vmatprep.mubr.bf16.mxu0 (!%p1958_p4), %v2680_v3  ;;  %592 = vmatprep.mubr.bf16.mxu1 (!%p1958_p4), %v2680_v3  ;;  %v2322_v4 = vld [vmem:[%s3038_s11 + $0x14] ss:$8 sps:$4 sm:$0xff] (!%p1958_p4)   ;;  %v2324_v5 = vld [vmem:[%s3038_s11 + $0x10] ss:$8 sps:$4 sm:$0xff] (!%p1958_p4)   ;;  %v2343_v18 = vld [vmem:[%s3030_s5] sm:$0xff] (!%p1958_p4)  }
  0xcb   : > { %520 = vmatprep.subr.bf16.mxu0 (!%p1958_p4), %v2319_v1  ;;  %2141 = vmatprep.subr.bf16.mxu1 (!%p1958_p4), %v2319_v1  ;;  %v2325_v6 = vld [vmem:[%s3038_s11 + $0x24] ss:$8 sps:$4 sm:$0xff] (!%p1958_p4)   ;;  %v2327_v7 = vld [vmem:[%s3038_s11 + $0x20] ss:$8 sps:$4 sm:$0xff] (!%p1958_p4)   ;;  %v2328_v8 = vld [vmem:[%s3038_s11 + $0x34] ss:$8 sps:$4 sm:$0xff] (!%p1958_p4)  }
  0xcc   : > { %521 = vmatpush1.bf16.msra.mxu0 (!%p1958_p4), %v2321_v2  ;;  %2149 = vmatpush1.bf16.msra.mxu1 (!%p1958_p4), %v2321_v2  ;;  %v2330_v9 = vld [vmem:[%s3038_s11 + $0x30] ss:$8 sps:$4 sm:$0xff] (!%p1958_p4)   ;;  %v2331_v10 = vld [vmem:[%s3038_s11 + $0x44] ss:$8 sps:$4 sm:$0xff] (!%p1958_p4)   ;;  %v2333_v11 = vld [vmem:[%s3038_s11 + $0x40] ss:$8 sps:$4 sm:$0xff] (!%p1958_p4)  }
  0xcd   : > { %522 = vmatprep.subr.bf16.mxu0 (!%p1958_p4), %v2322_v4  ;;  %2142 = vmatprep.subr.bf16.mxu1 (!%p1958_p4), %v2322_v4  ;;  %v2334_v12 = vld [vmem:[%s3038_s11 + $0x54] ss:$8 sps:$4 sm:$0xff] (!%p1958_p4)   ;;  %v2336_v13 = vld [vmem:[%s3038_s11 + $0x50] ss:$8 sps:$4 sm:$0xff] (!%p1958_p4)   ;;  %v2337_v14 = vld [vmem:[%s3038_s11 + $0x64] ss:$8 sps:$4 sm:$0xff] (!%p1958_p4)  }
  0xce   : > { %v2339_v15 = vld [vmem:[%s3038_s11 + $0x60] ss:$8 sps:$4 sm:$0xff] (!%p1958_p4)   ;;  %v2340_v16 = vld [vmem:[%s3038_s11 + $0x74] ss:$8 sps:$4 sm:$0xff] (!%p1958_p4)   ;;  %v2342_v17 = vld [vmem:[%s3038_s11 + $0x70] ss:$8 sps:$4 sm:$0xff] (!%p1958_p4)  }
  0xcf   : > { %v2344_v19 = vld [vmem:[%s3030_s5 + $0x20] sm:$0xff] (!%p1958_p4)   ;;  %v2345_v20 = vld [vmem:[%s3030_s5 + $0x8] sm:$0xff] (!%p1958_p4)   ;;  %v2347_v22 = vld [vmem:[%s3030_s5 + $0x10] sm:$0xff] (!%p1958_p4)   ;;  %s2025_s10 = sshll.u32 (!%p1958_p4), %s3752_s7, 6  ;;  %vm734_vm1 = vcmask (!%p1958_p4), 7168  }
  0xd0   : > { %523 = vmatpush1.bf16.msra.mxu0 (!%p1958_p4), %v2324_v5  ;;  %2150 = vmatpush1.bf16.msra.mxu1 (!%p1958_p4), %v2324_v5  ;;  %v2346_v21 = vld [vmem:[%s3030_s5 + $0x28] sm:$0xff] (!%p1958_p4)   ;;  %v2348_v23 = vld [vmem:[%s3030_s5 + $0x30] sm:$0xff] (!%p1958_p4)   ;;  %v2349_v24 = vld [vmem:[%s3030_s5 + $0x18] sm:$0xff] (!%p1958_p4)   ;;  %s3120_s28 = scalar_lea.vmem (!%p1958_p4), [#allocation3], %s2025_s10  ;;  %s3124_s24 = scalar_lea.vmem (!%p1958_p4), [#allocation4], %s2025_s10 }
  0xd1   : > { %524 = vmatprep.subr.bf16.mxu0 %v2325_v6  ;;  %2143 = vmatprep.subr.bf16.mxu1 %v2325_v6  ;;  %v2350_v25 = vld [vmem:[%s3030_s5 + $0x38] sm:$0xff]  }
  0xd4   : > { %525 = vmatpush1.bf16.msra.mxu0 %v2327_v7  ;;  %2151 = vmatpush1.bf16.msra.mxu1 %v2327_v7 }
  0xd5   : > { %526 = vmatprep.subr.bf16.mxu0 %v2328_v8  ;;  %2144 = vmatprep.subr.bf16.mxu1 %v2328_v8 }
  0xd8   : > { %527 = vmatpush1.bf16.msra.mxu0 %v2330_v9  ;;  %2152 = vmatpush1.bf16.msra.mxu1 %v2330_v9 }
  0xd9   : > { %528 = vmatprep.subr.bf16.mxu0 %v2331_v10  ;;  %2145 = vmatprep.subr.bf16.mxu1 %v2331_v10 }
  0xdc   : > { %529 = vmatpush1.bf16.msra.mxu0 %v2333_v11  ;;  %2153 = vmatpush1.bf16.msra.mxu1 %v2333_v11 }
  0xdd   : > { %530 = vmatprep.subr.bf16.mxu0 %v2334_v12  ;;  %2146 = vmatprep.subr.bf16.mxu1 %v2334_v12 }
  0xe0   : > { %531 = vmatpush1.bf16.msra.mxu0 %v2336_v13  ;;  %2154 = vmatpush1.bf16.msra.mxu1 %v2336_v13 }
  0xe1   : > { %532 = vmatprep.subr.bf16.mxu0 %v2337_v14  ;;  %2147 = vmatprep.subr.bf16.mxu1 %v2337_v14 }
  0xe4   : > { %533 = vmatpush1.bf16.msra.mxu0 %v2339_v15  ;;  %2155 = vmatpush1.bf16.msra.mxu1 %v2339_v15 }
  0xe5   : > { %534 = vmatprep.subr.bf16.mxu0 %v2340_v16  ;;  %2148 = vmatprep.subr.bf16.mxu1 %v2340_v16 }
  0xe8   : > { %535 = vmatpush1.bf16.msra.mxu0 %v2342_v17  ;;  %2156 = vmatpush1.bf16.msra.mxu1 %v2342_v17 }
  0xeb   : > { %553 = vmatmul.mubr.bf16.vlgmr.msra.gmra.mrb[0].mxu0 %v2343_v18  ;;  %593 = vmatmul.mubr.bf16.vlgmr.msra.gmra.mrb[0].mxu1 %v2344_v19 }
  0xec   : > { %562 = vmatprep.mubr.bf16.mxu0 %v2680_v3  ;;  %602 = vmatprep.mubr.bf16.mxu1 %v2680_v3 }
  0xf3   : > { %563 = vmatmul.mubr.bf16.gmra.mrb[4].mxu0 %v2345_v20  ;;  %603 = vmatmul.mubr.bf16.gmra.mrb[4].mxu1 %v2346_v21 }
  0xf4   : > { %572 = vmatprep.mubr.bf16.mxu0 %v2680_v3  ;;  %612 = vmatprep.mubr.bf16.mxu1 %v2680_v3 }
  0xfb   : > { %573 = vmatmul.mubr.bf16.gmra.mrb[8].mxu0 %v2347_v22  ;;  %613 = vmatmul.mubr.bf16.gmra.mrb[8].mxu1 %v2348_v23 }
  0xfc   : > { %582 = vmatprep.mubr.bf16.mxu0 %v2680_v3  ;;  %622 = vmatprep.mubr.bf16.mxu1 %v2680_v3 }
 0x103   : > { %583 = vmatmul.mubr.bf16.gmra.mrb[12].mxu0 %v2349_v24  ;;  %623 = vmatmul.mubr.bf16.gmra.mrb[12].mxu1 %v2350_v25 }
 0x1be   : > { %v554_v26 = vpop.f32.mrb[0].mxu0  ;;  %v594_v27 = vpop.f32.mrb[0].mxu1 }
 0x1bf   : > { %v596_v28 = vpop.f32.mrb[1].mxu1  ;;  %686 = vadd.xlane.f32.xlu0 %v554_v26  ;;  %v556_v29 = vpop.f32.mrb[1].mxu0  ;;  %v767_v46 = vmul.f32 %v554_v26, %v554_v26  ;;  %v775_v53 = vmul.f32 %v594_v27, %v594_v27 }
 0x1c0   : > { %v558_v30 = vpop.f32.mrb[2].mxu0  ;;  %v598_v31 = vpop.f32.mrb[2].mxu1 }
 0x1c1   : > { %v633_v32 = vpack.c.bf16 %v558_v30, %v554_v26  ;;  %v637_v33 = vpack.c.bf16 %v598_v31, %v594_v27  ;;  %704 = vadd.xlane.f32.xlu1 %v598_v31  ;;  %v560_v34 = vpop.f32.mrb[3].mxu0  ;;  %v600_v35 = vpop.f32.mrb[3].mxu1  ;;  %v768_v38 = vmul.f32 %v558_v30, %v558_v30  ;;  %v776_v41 = vmul.f32 %v598_v31, %v598_v31  ;;  %v670_v26 = vld [vmem:[#allocation5] sm:$0xff] }
 0x1c2   : > { %v652_v36 = vpack.c.bf16 %v560_v34, %v556_v29  ;;  %v656_v37 = vpack.c.bf16 %v600_v35, %v596_v28  ;;  %v679_v28 = vld [vmem:[#allocation5 + $0x48] sm:$0xff]  ;;  %v678_v31 = vld [vmem:[#allocation5 + $0x40] sm:$0xff] }
 0x1c3   : > { %644 = vst [vmem:[%s3120_s28] sm:$0xff] %v633_v32  ;;  %648 = vst [vmem:[%s3120_s28 + $0x20] sm:$0xff] %v637_v33  ;;  %702 = vadd.xlane.f32.xlu0 %v594_v27  ;;  %v752_v34 = vld [vmem:[#allocation6 + $0x8] sm:$0xff] }
 0x1c4   : > { %662 = vst [vmem:[%s3124_s24] sm:$0xff] %v652_v36  ;;  %666 = vst [vmem:[%s3124_s24 + $0x20] sm:$0xff] %v656_v37  ;;  %v671_v37 = vld [vmem:[#allocation5 + $0x8] sm:$0xff] }
 0x1c5   : > { %785 = vadd.xlane.f32.xlu1 %v768_v38 }
 0x1c6   : > { %v564_v39 = vpop.f32.mrb[4].mxu0  ;;  %v604_v40 = vpop.f32.mrb[4].mxu1 }
 0x1c7   : > { %688 = vadd.xlane.f32.xlu0 %v558_v30  ;;  %v566_v42 = vpop.f32.mrb[5].mxu0  ;;  %v606_v43 = vpop.f32.mrb[5].mxu1  ;;  %v769_v2 = vmul.f32 %v564_v39, %v564_v39  ;;  %v777_v10 = vmul.f32 %v604_v40, %v604_v40 }
 0x1c8   : > { %v568_v44 = vpop.f32.mrb[6].mxu0  ;;  %v608_v45 = vpop.f32.mrb[6].mxu1 }
 0x1c9   : > { %801 = vadd.xlane.f32.xlu1 %v776_v41  ;;  %v634_v47 = vpack.c.bf16 %v568_v44, %v564_v39  ;;  %v570_v48 = vpop.f32.mrb[7].mxu0  ;;  %v638_v49 = vpack.c.bf16 %v608_v45, %v604_v40  ;;  %v610_v50 = vpop.f32.mrb[7].mxu1  ;;  %v770_v5 = vmul.f32 %v568_v44, %v568_v44  ;;  %v778_v17 = vmul.f32 %v608_v45, %v608_v45 }
 0x1ca   : > { %v653_v51 = vpack.c.bf16 %v570_v48, %v566_v42  ;;  %v657_v52 = vpack.c.bf16 %v610_v50, %v606_v43  ;;  %v751_v43 = vld [vmem:[#allocation6] sm:$0xff] }
 0x1cb   : > { %783 = vadd.xlane.f32.xlu0 %v767_v46  ;;  %645 = vst [vmem:[%s3120_s28 + $0x8] sm:$0xff] %v634_v47  ;;  %649 = vst [vmem:[%s3120_s28 + $0x28] sm:$0xff] %v638_v49  ;;  %v672_v46 = vld [vmem:[#allocation5 + $0x10] sm:$0xff]  ;;  %v759_v49 = vld [vmem:[#allocation6 + $0x40] sm:$0xff] }
 0x1cc   : > { %663 = vst [vmem:[%s3124_s24 + $0x8] sm:$0xff] %v653_v51  ;;  %667 = vst [vmem:[%s3124_s24 + $0x28] sm:$0xff] %v657_v52  ;;  %v673_v52 = vld [vmem:[#allocation5 + $0x18] sm:$0xff] }
 0x1cd   : > { %690 = vadd.xlane.f32.xlu1 %v564_v39 }
 0x1ce   : > { %v574_v54 = vpop.f32.mrb[8].mxu0  ;;  %v614_v55 = vpop.f32.mrb[8].mxu1 }
 0x1cf   : > { %799 = vadd.xlane.f32.xlu0 %v775_v53  ;;  %v576_v56 = vpop.f32.mrb[9].mxu0  ;;  %v616_v57 = vpop.f32.mrb[9].mxu1  ;;  %v771_v18 = vmul.f32 %v574_v54, %v574_v54  ;;  %v779_v20 = vmul.f32 %v614_v55, %v614_v55 }
 0x1d0   : > { %v578_v58 = vpop.f32.mrb[10].mxu0  ;;  %v618_v59 = vpop.f32.mrb[10].mxu1 }
 0x1d1   : > { %692 = vadd.xlane.f32.xlu1 %v568_v44  ;;  %v635_v60 = vpack.c.bf16 %v578_v58, %v574_v54  ;;  %v580_v61 = vpop.f32.mrb[11].mxu0  ;;  %v639_v62 = vpack.c.bf16 %v618_v59, %v614_v55  ;;  %v620_v63 = vpop.f32.mrb[11].mxu1  ;;  %v772_v19 = vmul.f32 %v578_v58, %v578_v58  ;;  %v780_v21 = vmul.f32 %v618_v59, %v618_v59 }
 0x1d2   : > { %v654_v0 = vpack.c.bf16 %v580_v61, %v576_v56  ;;  %v658_v1 = vpack.c.bf16 %v620_v63, %v616_v57  ;;  %v753_v61 = vld [vmem:[#allocation6 + $0x10] sm:$0xff] }
 0x1d3   : > { %706 = vadd.xlane.f32.xlu0 %v604_v40  ;;  %646 = vst [vmem:[%s3120_s28 + $0x10] sm:$0xff] %v635_v60  ;;  %650 = vst [vmem:[%s3120_s28 + $0x30] sm:$0xff] %v639_v62  ;;  %v760_v40 = vld [vmem:[#allocation6 + $0x48] sm:$0xff] }
 0x1d4   : > { %664 = vst [vmem:[%s3124_s24 + $0x10] sm:$0xff] %v654_v0  ;;  %668 = vst [vmem:[%s3124_s24 + $0x30] sm:$0xff] %v658_v1  ;;  %v754_v0 = vld [vmem:[#allocation6 + $0x18] sm:$0xff] }
 0x1d5   : > { %708 = vadd.xlane.f32.xlu1 %v608_v45 }
 0x1d6   : > { %v584_v3 = vpop.f32.mrb[12].mxu0  ;;  %v624_v4 = vpop.f32.mrb[12].mxu1 }
 0x1d7   : > { %787 = vadd.xlane.f32.xlu0 %v769_v2  ;;  %v586_v6 = vpop.f32.mrb[13].mxu0  ;;  %v626_v7 = vpop.f32.mrb[13].mxu1  ;;  %v773_v22 = vmul.f32 %v584_v3, %v584_v3  ;;  %v781_v24 = vmul.f32 %v624_v4, %v624_v4 }
 0x1d8   : > { %v588_v8 = vpop.f32.mrb[14].mxu0  ;;  %v628_v9 = vpop.f32.mrb[14].mxu1 }
 0x1d9   : > { %789 = vadd.xlane.f32.xlu1 %v770_v5  ;;  %v636_v11 = vpack.c.bf16 %v588_v8, %v584_v3  ;;  %v590_v12 = vpop.f32.mrb[15].mxu0  ;;  %v640_v13 = vpack.c.bf16 %v628_v9, %v624_v4  ;;  %v630_v14 = vpop.f32.mrb[15].mxu1  ;;  %v774_v23 = vmul.f32 %v588_v8, %v588_v8  ;;  %v782_v25 = vmul.f32 %v628_v9, %v628_v9 }
 0x1da   : > { %v655_v15 = vpack.c.bf16 %v590_v12, %v586_v6  ;;  %v659_v16 = vpack.c.bf16 %v630_v14, %v626_v7  ;;  %v762_v6 = vld [vmem:[#allocation6 + $0x58] sm:$0xff]  ;;  %v675_v12 = vld [vmem:[#allocation5 + $0x28] sm:$0xff] }
 0x1db   : > { %803 = vadd.xlane.f32.xlu0 %v777_v10  ;;  %647 = vst [vmem:[%s3120_s28 + $0x18] sm:$0xff] %v636_v11  ;;  %651 = vst [vmem:[%s3120_s28 + $0x38] sm:$0xff] %v640_v13 }
 0x1dc   : > { %665 = vst [vmem:[%s3124_s24 + $0x18] sm:$0xff] %v655_v15  ;;  %669 = vst [vmem:[%s3124_s24 + $0x38] sm:$0xff] %v659_v16  ;;  %v682_v15 = vld [vmem:[#allocation5 + $0x60] sm:$0xff] }
 0x1dd   : > { %805 = vadd.xlane.f32.xlu1 %v778_v17 }
 0x1df   : > { %694 = vadd.xlane.f32.xlu0 %v574_v54 }
 0x1e1   : > { %696 = vadd.xlane.f32.xlu1 %v578_v58  ;;  %v681_v58 = vld [vmem:[#allocation5 + $0x58] sm:$0xff] }
 0x1e3   : > { %710 = vadd.xlane.f32.xlu0 %v614_v55  ;;  %v680_v55 = vld [vmem:[#allocation5 + $0x50] sm:$0xff] }
 0x1e5   : > { %712 = vadd.xlane.f32.xlu1 %v618_v59 }
 0x1e7   : > { %791 = vadd.xlane.f32.xlu0 %v771_v18  ;;  %v683_v18 = vld [vmem:[#allocation5 + $0x68] sm:$0xff] }
 0x1e9   : > { %793 = vadd.xlane.f32.xlu1 %v772_v19 }
 0x1eb   : > { %807 = vadd.xlane.f32.xlu0 %v779_v20 }
 0x1ed   : > { %809 = vadd.xlane.f32.xlu1 %v780_v21  ;;  %v755_v21 = vld [vmem:[#allocation6 + $0x20] sm:$0xff] }
 0x1ef   : > { %698 = vadd.xlane.f32.xlu0 %v584_v3  ;;  %v761_v3 = vld [vmem:[#allocation6 + $0x50] sm:$0xff] }
 0x1f1   : > { %700 = vadd.xlane.f32.xlu1 %v588_v8 }
 0x1f3   : > { %714 = vadd.xlane.f32.xlu0 %v624_v4 }
 0x1f5   : > { %716 = vadd.xlane.f32.xlu1 %v628_v9  ;;  %v674_v9 = vld [vmem:[#allocation5 + $0x20] sm:$0xff] }
 0x1f7   : > { %795 = vadd.xlane.f32.xlu0 %v773_v22 }
 0x1f9   : > { %797 = vadd.xlane.f32.xlu1 %v774_v23 }
 0x1fb   : > { %811 = vadd.xlane.f32.xlu0 %v781_v24  ;;  %v756_v24 = vld [vmem:[#allocation6 + $0x28] sm:$0xff] }
 0x1fd   : > { %813 = vadd.xlane.f32.xlu1 %v782_v25 }
 0x24c   : > { %v687_v27 = vpop.xlane.xlu0 %686 }
 0x24d   : > { %v718_v29 = vadd.f32 %v687_v27, %v670_v26  ;;  %v763_v27 = vld [vmem:[#allocation6 + $0x60] sm:$0xff] }
 0x24e   : > { %v705_v30 = vpop.xlane.xlu1 %704 }
 0x24f   : > { %735 = vst.msk [vmem:[#allocation5] sm:$0xff] %vm734_vm1, %v718_v29  ;;  %v727_v32 = vadd.f32 %v705_v30, %v679_v28  ;;  %v764_v30 = vld [vmem:[#allocation6 + $0x68] sm:$0xff] }
 0x250   : > { %v703_v33 = vpop.xlane.xlu0 %702 }
 0x251   : > { %744 = vst.msk [vmem:[#allocation5 + $0x48] sm:$0xff] %vm734_vm1, %v727_v32  ;;  %v726_v35 = vadd.f32 %v703_v33, %v678_v31  ;;  %v676_v33 = vld [vmem:[#allocation5 + $0x30] sm:$0xff] }
 0x252   : > { %v786_v36 = vpop.xlane.xlu1 %785 }
 0x253   : > { %743 = vst.msk [vmem:[#allocation5 + $0x40] sm:$0xff] %vm734_vm1, %v726_v35  ;;  %v816_v38 = vadd.f32 %v786_v36, %v752_v34  ;;  %v677_v36 = vld [vmem:[#allocation5 + $0x38] sm:$0xff] }
 0x254   : > { %v689_v39 = vpop.xlane.xlu0 %688 }
 0x255   : > { %832 = vst.msk [vmem:[#allocation6 + $0x8] sm:$0xff] %vm734_vm1, %v816_v38  ;;  %v719_v41 = vadd.f32 %v689_v39, %v671_v37  ;;  %v684_v39 = vld [vmem:[#allocation5 + $0x70] sm:$0xff] }
 0x256   : > { %v802_v42 = vpop.xlane.xlu1 %801 }
 0x257   : > { %736 = vst.msk [vmem:[#allocation5 + $0x8] sm:$0xff] %vm734_vm1, %v719_v41  ;;  %v824_v44 = vadd.f32 %v802_v42, %v760_v40  ;;  %v685_v42 = vld [vmem:[#allocation5 + $0x78] sm:$0xff] }
 0x258   : > { %v784_v45 = vpop.xlane.xlu0 %783 }
 0x259   : > { %840 = vst.msk [vmem:[#allocation6 + $0x48] sm:$0xff] %vm734_vm1, %v824_v44  ;;  %v815_v47 = vadd.f32 %v784_v45, %v751_v43  ;;  %v757_v45 = vld [vmem:[#allocation6 + $0x30] sm:$0xff] }
 0x25a   : > { %v691_v48 = vpop.xlane.xlu1 %690 }
 0x25b   : > { %831 = vst.msk [vmem:[#allocation6] sm:$0xff] %vm734_vm1, %v815_v47  ;;  %v720_v50 = vadd.f32 %v691_v48, %v672_v46  ;;  %v758_v48 = vld [vmem:[#allocation6 + $0x38] sm:$0xff] }
 0x25c   : > { %v800_v51 = vpop.xlane.xlu0 %799 }
 0x25d   : > { %737 = vst.msk [vmem:[#allocation5 + $0x10] sm:$0xff] %vm734_vm1, %v720_v50  ;;  %v823_v53 = vadd.f32 %v800_v51, %v759_v49  ;;  %v765_v51 = vld [vmem:[#allocation6 + $0x70] sm:$0xff] }
 0x25e   : > { %v693_v54 = vpop.xlane.xlu1 %692 }
 0x25f   : > { %839 = vst.msk [vmem:[#allocation6 + $0x40] sm:$0xff] %vm734_vm1, %v823_v53  ;;  %v721_v56 = vadd.f32 %v693_v54, %v673_v52  ;;  %v766_v54 = vld [vmem:[#allocation6 + $0x78] sm:$0xff] }
 0x260   : > { %v707_v57 = vpop.xlane.xlu0 %706 }
 0x261   : > { %738 = vst.msk [vmem:[#allocation5 + $0x18] sm:$0xff] %vm734_vm1, %v721_v56  ;;  %v728_v59 = vadd.f32 %v707_v57, %v680_v55 }
 0x262   : > { %v709_v60 = vpop.xlane.xlu1 %708 }
 0x263   : > { %745 = vst.msk [vmem:[#allocation5 + $0x50] sm:$0xff] %vm734_vm1, %v728_v59  ;;  %v729_v62 = vadd.f32 %v709_v60, %v681_v58 }
 0x264   : > { %v788_v63 = vpop.xlane.xlu0 %787 }
 0x265   : > { %746 = vst.msk [vmem:[#allocation5 + $0x58] sm:$0xff] %vm734_vm1, %v729_v62  ;;  %v817_v1 = vadd.f32 %v788_v63, %v753_v61 }
 0x266   : > { %v790_v2 = vpop.xlane.xlu1 %789 }
 0x267   : > { %833 = vst.msk [vmem:[#allocation6 + $0x10] sm:$0xff] %vm734_vm1, %v817_v1  ;;  %v818_v4 = vadd.f32 %v790_v2, %v754_v0 }
 0x268   : > { %v804_v5 = vpop.xlane.xlu0 %803 }
 0x269   : > { %834 = vst.msk [vmem:[#allocation6 + $0x18] sm:$0xff] %vm734_vm1, %v818_v4  ;;  %v825_v7 = vadd.f32 %v804_v5, %v761_v3 }
 0x26a   : > { %v806_v8 = vpop.xlane.xlu1 %805 }
 0x26b   : > { %841 = vst.msk [vmem:[#allocation6 + $0x50] sm:$0xff] %vm734_vm1, %v825_v7  ;;  %v826_v10 = vadd.f32 %v806_v8, %v762_v6 }
 0x26c   : > { %v695_v11 = vpop.xlane.xlu0 %694 }
 0x26d   : > { %842 = vst.msk [vmem:[#allocation6 + $0x58] sm:$0xff] %vm734_vm1, %v826_v10  ;;  %v722_v13 = vadd.f32 %v695_v11, %v674_v9 }
 0x26e   : > { %v697_v14 = vpop.xlane.xlu1 %696 }
 0x26f   : > { %739 = vst.msk [vmem:[#allocation5 + $0x20] sm:$0xff] %vm734_vm1, %v722_v13  ;;  %v723_v16 = vadd.f32 %v697_v14, %v675_v12 }
 0x270   : > { %v711_v17 = vpop.xlane.xlu0 %710 }
 0x271   : > { %740 = vst.msk [vmem:[#allocation5 + $0x28] sm:$0xff] %vm734_vm1, %v723_v16  ;;  %v730_v19 = vadd.f32 %v711_v17, %v682_v15 }
 0x272   : > { %v713_v20 = vpop.xlane.xlu1 %712 }
 0x273   : > { %747 = vst.msk [vmem:[#allocation5 + $0x60] sm:$0xff] %vm734_vm1, %v730_v19  ;;  %v731_v22 = vadd.f32 %v713_v20, %v683_v18 }
 0x274   : > { %v792_v23 = vpop.xlane.xlu0 %791 }
 0x275   : > { %748 = vst.msk [vmem:[#allocation5 + $0x68] sm:$0xff] %vm734_vm1, %v731_v22  ;;  %v819_v25 = vadd.f32 %v792_v23, %v755_v21 }
 0x276   : > { %v794_v26 = vpop.xlane.xlu1 %793 }
 0x277   : > { %835 = vst.msk [vmem:[#allocation6 + $0x20] sm:$0xff] %vm734_vm1, %v819_v25  ;;  %v820_v28 = vadd.f32 %v794_v26, %v756_v24 }
 0x278   : > { %v808_v29 = vpop.xlane.xlu0 %807 }
 0x279   : > { %836 = vst.msk [vmem:[#allocation6 + $0x28] sm:$0xff] %vm734_vm1, %v820_v28  ;;  %v827_v31 = vadd.f32 %v808_v29, %v763_v27 }
 0x27a   : > { %v810_v32 = vpop.xlane.xlu1 %809 }
 0x27b   : > { %843 = vst.msk [vmem:[#allocation6 + $0x60] sm:$0xff] %vm734_vm1, %v827_v31  ;;  %v828_v34 = vadd.f32 %v810_v32, %v764_v30 }
 0x27c   : > { %v699_v35 = vpop.xlane.xlu0 %698 }
 0x27d   : > { %844 = vst.msk [vmem:[#allocation6 + $0x68] sm:$0xff] %vm734_vm1, %v828_v34  ;;  %v724_v37 = vadd.f32 %v699_v35, %v676_v33 }
 0x27e   : > { %v701_v38 = vpop.xlane.xlu1 %700 }
 0x27f   : > { %741 = vst.msk [vmem:[#allocation5 + $0x30] sm:$0xff] %vm734_vm1, %v724_v37  ;;  %v725_v40 = vadd.f32 %v701_v38, %v677_v36 }
 0x280   : > { %v715_v41 = vpop.xlane.xlu0 %714 }
 0x281   : > { %742 = vst.msk [vmem:[#allocation5 + $0x38] sm:$0xff] %vm734_vm1, %v725_v40  ;;  %v732_v43 = vadd.f32 %v715_v41, %v684_v39 }
 0x282   : > { %v717_v44 = vpop.xlane.xlu1 %716 }
 0x283   : > { %749 = vst.msk [vmem:[#allocation5 + $0x70] sm:$0xff] %vm734_vm1, %v732_v43  ;;  %v733_v46 = vadd.f32 %v717_v44, %v685_v42 }
 0x284   : > { %v796_v47 = vpop.xlane.xlu0 %795 }
 0x285   : > { %750 = vst.msk [vmem:[#allocation5 + $0x78] sm:$0xff] %vm734_vm1, %v733_v46  ;;  %v821_v49 = vadd.f32 %v796_v47, %v757_v45 }
 0x286   : > { %v798_v50 = vpop.xlane.xlu1 %797 }
 0x287   : > { %837 = vst.msk [vmem:[#allocation6 + $0x30] sm:$0xff] %vm734_vm1, %v821_v49  ;;  %v822_v52 = vadd.f32 %v798_v50, %v758_v48 }
 0x288   : > { %v812_v53 = vpop.xlane.xlu0 %811 }
 0x289   : > { %838 = vst.msk [vmem:[#allocation6 + $0x38] sm:$0xff] %vm734_vm1, %v822_v52  ;;  %v829_v55 = vadd.f32 %v812_v53, %v765_v51 }
 0x28a   : > { %v814_v56 = vpop.xlane.xlu1 %813 }
 0x28b   : > { %845 = vst.msk [vmem:[#allocation6 + $0x70] sm:$0xff] %vm734_vm1, %v829_v55  ;;  %v830_v57 = vadd.f32 %v814_v56, %v766_v54 }
 0x28d   : > { %846 = vst.msk [vmem:[#allocation6 + $0x78] sm:$0xff] %vm734_vm1, %v830_v57 }
 0x28e PF: > { %s3753_s8 = sld [smem:[#allocation20_spill]] }
 0x294   : > { %p1986_p0 = scmp.ne.s32.totalorder %s3753_s8, 3 }
 0x295   : > { %v851_v58 = vld [vmem:[#allocation5] sm:$0xff] (!%p1986_p0)  ;;  %v852_v60 = vld [vmem:[#allocation5 + $0x8] sm:$0xff] (!%p1986_p0)  ;;  %v853_v1 = vld [vmem:[#allocation5 + $0x10] sm:$0xff] (!%p1986_p0)  ;;  %vm1107_vm9 = vcmask (!%p1986_p0), 7168  }
 0x296   : > { %850 = sbr.rel (%p1986_p0) target bundleno = 730 (0x2da), region = 56  ;;  %v883_v59 = vld [vmem:[#allocation6] sm:$0xff] (!%p1986_p0)  ;;  %v3173_v61 = vmul.f32 (!%p1986_p0), 0.001953125, %v851_v58  ;;  %v3175_v63 = vmul.f32 (!%p1986_p0), 0.001953125, %v852_v60  ;;  %v884_v0 = vld [vmem:[#allocation6 + $0x8] sm:$0xff] (!%p1986_p0)  ;;  %v885_v2 = vld [vmem:[#allocation6 + $0x10] sm:$0xff] (!%p1986_p0) }
 0x297   : > { %v899_v62 = vmul.f32 (!%p1986_p0), 0.001953125, %v883_v59  ;;  %v900_v3 = vmul.f32 (!%p1986_p0), 0.001953125, %v884_v0  ;;  %v3177_v4 = vmul.f32 (!%p1986_p0), 0.001953125, %v853_v1  ;;  %v901_v5 = vmul.f32 (!%p1986_p0), 0.001953125, %v885_v2  ;;  %v854_v6 = vld [vmem:[#allocation5 + $0x18] sm:$0xff] (!%p1986_p0)  ;;  %v855_v8 = vld [vmem:[#allocation5 + $0x20] sm:$0xff] (!%p1986_p0) }
 0x298   : > { %v886_v7 = vld [vmem:[#allocation6 + $0x18] sm:$0xff] (!%p1986_p0)  ;;  %v915_v9 = vmul.f32 (!%p1986_p0), %v3173_v61, %v3173_v61  ;;  %v916_v10 = vmul.f32 (!%p1986_p0), %v3175_v63, %v3175_v63  ;;  %v3183_v11 = vmul.f32 (!%p1986_p0), 0.001953125, %v854_v6  ;;  %v887_v13 = vld [vmem:[#allocation6 + $0x20] sm:$0xff] (!%p1986_p0)  ;;  %v856_v14 = vld [vmem:[#allocation5 + $0x28] sm:$0xff] (!%p1986_p0)  ;;  %v3187_v17 = vmul.f32 (!%p1986_p0), 0.001953125, %v855_v8 }
 0x299   : > { %v902_v12 = vmul.f32 (!%p1986_p0), 0.001953125, %v886_v7  ;;  %v888_v15 = vld [vmem:[#allocation6 + $0x28] sm:$0xff] (!%p1986_p0)  ;;  %v917_v16 = vmul.f32 (!%p1986_p0), %v3177_v4, %v3177_v4  ;;  %v903_v18 = vmul.f32 (!%p1986_p0), 0.001953125, %v887_v13  ;;  %v3189_v19 = vmul.f32 (!%p1986_p0), 0.001953125, %v856_v14  ;;  %v857_v20 = vld [vmem:[#allocation5 + $0x30] sm:$0xff] (!%p1986_p0)  ;;  %v858_v38 = vld [vmem:[#allocation5 + $0x38] sm:$0xff] (!%p1986_p0) }
 0x29a   : > { %v931_v21 = vsub.f32 (!%p1986_p0), %v899_v62, %v915_v9  ;;  %v932_v22 = vsub.f32 (!%p1986_p0), %v900_v3, %v916_v10  ;;  %v918_v23 = vmul.f32 (!%p1986_p0), %v3183_v11, %v3183_v11  ;;  %v904_v24 = vmul.f32 (!%p1986_p0), 0.001953125, %v888_v15  ;;  %v889_v29 = vld [vmem:[#allocation6 + $0x30] sm:$0xff] (!%p1986_p0)  ;;  %v859_v39 = vld [vmem:[#allocation5 + $0x40] sm:$0xff] (!%p1986_p0)  ;;  %v890_v44 = vld [vmem:[#allocation6 + $0x38] sm:$0xff] (!%p1986_p0) }
 0x29b   : > { %v933_v25 = vsub.f32 (!%p1986_p0), %v901_v5, %v917_v16  ;;  %v919_v26 = vmul.f32 (!%p1986_p0), %v3187_v17, %v3187_v17  ;;  %v920_v27 = vmul.f32 (!%p1986_p0), %v3189_v19, %v3189_v19  ;;  %v3197_v28 = vmul.f32 (!%p1986_p0), 0.001953125, %v857_v20  ;;  %v891_v48 = vld [vmem:[#allocation6 + $0x40] sm:$0xff] (!%p1986_p0)  ;;  %v860_v50 = vld [vmem:[#allocation5 + $0x48] sm:$0xff] (!%p1986_p0)  ;;  %v861_v53 = vld [vmem:[#allocation5 + $0x50] sm:$0xff] (!%p1986_p0) }
 0x29c   : > { %v3199_v30 = vmax.f32 (!%p1986_p0), %v931_v21, 0.0  ;;  %v3201_v31 = vmax.f32 (!%p1986_p0), %v932_v22, 0.0  ;;  %v934_v33 = vsub.f32 (!%p1986_p0), %v902_v12, %v918_v23  ;;  %v905_v36 = vmul.f32 (!%p1986_p0), 0.001953125, %v889_v29  ;;  %v892_v56 = vld [vmem:[#allocation6 + $0x48] sm:$0xff] (!%p1986_p0)  ;;  %v893_v62 = vld [vmem:[#allocation6 + $0x50] sm:$0xff] (!%p1986_p0)  ;;  %v862_v2 = vld [vmem:[#allocation5 + $0x58] sm:$0xff] (!%p1986_p0) }
 0x29d   : > { %v3203_v32 = vmax.f32 %v933_v25, 0.0  ;;  %v935_v34 = vsub.f32 %v903_v18, %v919_v26  ;;  %v936_v35 = vsub.f32 %v904_v24, %v920_v27  ;;  %v921_v37 = vmul.f32 %v3197_v28, %v3197_v28  ;;  %v894_v13 = vld [vmem:[#allocation6 + $0x58] sm:$0xff] }
 0x29e   : > { %2351 = vrsqrt.f32 %v3199_v30  ;;  %vm965_vm2 = vcmp.eq.f32.partialorder %v3199_v30, inf  ;;  %vm967_vm3 = vcmp.eq.f32.partialorder %v3199_v30, 0.0  ;;  %v968_v40 = vand.u32 2147483648, %v3199_v30 }
 0x29f   : > { %2353 = vrsqrt.f32 %v3201_v31  ;;  %v3213_v41 = vmax.f32 %v934_v33, 0.0  ;;  %v3215_v42 = vmax.f32 %v935_v34, 0.0  ;;  %v3217_v43 = vmax.f32 %v936_v35, 0.0 }
 0x2a0   : > { %2355 = vrsqrt.f32 %v3203_v32  ;;  %vm972_vm4 = vcmp.eq.f32.partialorder %v3201_v31, inf  ;;  %v937_v45 = vsub.f32 %v905_v36, %v921_v37  ;;  %v3220_v46 = vmul.f32 0.001953125, %v858_v38 }
 0x2a1   : > { %v3222_v47 = vmul.f32 0.001953125, %v859_v39  ;;  %vm974_vm5 = vcmp.eq.f32.partialorder %v3201_v31, 0.0  ;;  %v975_v49 = vand.u32 2147483648, %v3201_v31  ;;  %vm979_vm6 = vcmp.eq.f32.partialorder %v3203_v32, inf }
 0x2a2   : > { %2357 = vrsqrt.f32 %v3213_v41  ;;  %vm981_vm7 = vcmp.eq.f32.partialorder %v3203_v32, 0.0  ;;  %v982_v51 = vand.u32 2147483648, %v3203_v32  ;;  %v906_v52 = vmul.f32 0.001953125, %v890_v44 }
 0x2a3   : > { %2359 = vrsqrt.f32 %v3215_v42  ;;  %vm986_vm8 = vcmp.eq.f32.partialorder %v3213_v41, inf  ;;  %v989_v54 = vand.u32 2147483648, %v3213_v41  ;;  %v907_v55 = vmul.f32 0.001953125, %v891_v48 }
 0x2a4   : > { %2361 = vrsqrt.f32 %v3217_v43  ;;  %vm988_vm10 = vcmp.eq.f32.partialorder %v3213_v41, 0.0  ;;  %vm993_vm11 = vcmp.eq.f32.partialorder %v3215_v42, inf  ;;  %v3236_v57 = vmax.f32 %v937_v45, 0.0 }
 0x2a5   : > { %v922_v58 = vmul.f32 %v3220_v46, %v3220_v46  ;;  %v923_v59 = vmul.f32 %v3222_v47, %v3222_v47  ;;  %v3242_v60 = vmul.f32 0.001953125, %v860_v50  ;;  %vm995_vm12 = vcmp.eq.f32.partialorder %v3215_v42, 0.0 }
 0x2a6   : > { %v996_v0 = vand.u32 2147483648, %v3215_v42  ;;  %vm1000_vm13 = vcmp.eq.f32.partialorder %v3217_v43, inf  ;;  %v3247_v1 = vmul.f32 0.001953125, %v861_v53  ;;  %vm1002_vm14 = vcmp.eq.f32.partialorder %v3217_v43, 0.0 }
 0x2a7   : > { %v1003_v5 = vand.u32 2147483648, %v3217_v43  ;;  %2363 = vrsqrt.f32 %v3236_v57  ;;  %v908_v6 = vmul.f32 0.001953125, %v892_v56  ;;  %v938_v9 = vsub.f32 %v906_v52, %v922_v58 }
 0x2a8   : > { %v2352_v3 = vpop.eup %2351  ;;  %v939_v10 = vsub.f32 %v907_v55, %v923_v59  ;;  %v909_v12 = vmul.f32 0.001953125, %v893_v62  ;;  %vm1007_vm15 = vcmp.eq.f32.partialorder %v3236_v57, inf  ;;  %v924_v16 = vmul.f32 %v3242_v60, %v3242_v60 }
 0x2a9   : > { %v2354_v7 = vpop.eup %2353  ;;  %v964_v8 = vmul.f32 %v2352_v3, %v3199_v30  ;;  %v3257_v18 = vmul.f32 0.001953125, %v862_v2  ;;  %v3263_v22 = vmax.f32 %v938_v9, 0.0  ;;  %v925_v23 = vmul.f32 %v3247_v1, %v3247_v1 }
 0x2aa   : > { %v2356_v14 = vpop.eup %2355  ;;  %v971_v15 = vmul.f32 %v2354_v7, %v3201_v31  ;;  %v3272_v26 = vmax.f32 %v939_v10, 0.0  ;;  %v3274_v27 = vmul.f32 0.001953125, %v894_v13  ;;  %v940_v48 = vsub.f32 %v908_v6, %v924_v16  ;;  %v864_v10 = vld [vmem:[#allocation5 + $0x68] sm:$0xff] }
 0x2ab   : > { %v966_v20 = vsel %vm965_vm2, %v3199_v30, %v964_v8  ;;  %v978_v21 = vmul.f32 %v2356_v14, %v3203_v32  ;;  %2365 = vrsqrt.f32 %v3263_v22  ;;  %v926_v39 = vmul.f32 %v3257_v18, %v3257_v18  ;;  %v895_v8 = vld [vmem:[#allocation6 + $0x60] sm:$0xff]  ;;  %v896_v13 = vld [vmem:[#allocation6 + $0x68] sm:$0xff] }
 0x2ac   : > { %v969_v24 = vsel %vm967_vm3, %v968_v40, %v966_v20  ;;  %v973_v25 = vsel %vm972_vm4, %v3201_v31, %v971_v15  ;;  %v2358_v29 = vpop.eup %2357  ;;  %2367 = vrsqrt.f32 %v3272_v26  ;;  %vm1009_vm0 = vcmp.eq.f32.partialorder %v3236_v57, 0.0 }
 0x2ad   : > { %v1075_v33 = vmul.f32 1.6448536, %v969_v24  ;;  %v976_v34 = vsel %vm974_vm5, %v975_v49, %v973_v25  ;;  %v980_v35 = vsel %vm979_vm6, %v3203_v32, %v978_v21  ;;  %v2360_v30 = vpop.eup %2359  ;;  %v985_v38 = vmul.f32 %v2358_v29, %v3213_v41  ;;  %v866_v29 = vld [vmem:[#allocation5 + $0x78] sm:$0xff] }
 0x2ae   : > { %v1076_v36 = vmul.f32 1.6448536, %v976_v34  ;;  %v983_v37 = vsel %vm981_vm7, %v982_v51, %v980_v35  ;;  %v2362_v40 = vpop.eup %2361  ;;  %v992_v45 = vmul.f32 %v2360_v30, %v3215_v42  ;;  %v941_v51 = vsub.f32 %v909_v12, %v925_v23  ;;  %v865_v12 = vld [vmem:[#allocation5 + $0x70] sm:$0xff]  ;;  %v898_v35 = vld [vmem:[#allocation6 + $0x78] sm:$0xff] }
 0x2af   : > { %v1091_v31 = vadd.f32 %v1075_v33, %v3173_v61  ;;  %v1077_v44 = vmul.f32 1.6448536, %v983_v37  ;;  %v987_v50 = vsel %vm986_vm8, %v3213_v41, %v985_v38  ;;  %v999_v32 = vmul.f32 %v2362_v40, %v3217_v43 }
 0x2b0   : > { %v1092_v49 = vadd.f32 %v1076_v36, %v3175_v63  ;;  %v990_v61 = vsel %vm988_vm10, %v989_v54, %v987_v50  ;;  %v994_v63 = vsel %vm993_vm11, %v3215_v42, %v992_v45  ;;  %v1010_v41 = vand.u32 2147483648, %v3236_v57 }
 0x2b1   : > { %1108 = vst.msk [vmem:[#allocation7] sm:$0xff] %vm1107_vm9, %v1091_v31  ;;  %v1093_v52 = vadd.f32 %v1077_v44, %v3177_v4  ;;  %v2364_v53 = vpop.eup %2363  ;;  %v1078_v55 = vmul.f32 1.6448536, %v990_v61  ;;  %v997_v56 = vsel %vm995_vm12, %v996_v0, %v994_v63  ;;  %v1001_v4 = vsel %vm1000_vm13, %v3217_v43, %v999_v32 }
 0x2b2   : > { %1109 = vst.msk [vmem:[#allocation7 + $0x8] sm:$0xff] %vm1107_vm9, %v1092_v49  ;;  %v1079_v54 = vmul.f32 1.6448536, %v997_v56  ;;  %v1004_v58 = vsel %vm1002_vm14, %v1003_v5, %v1001_v4  ;;  %v1006_v59 = vmul.f32 %v2364_v53, %v3236_v57  ;;  %v3317_v0 = vmax.f32 %v940_v48, 0.0 }
 0x2b3   : > { %1110 = vst.msk [vmem:[#allocation7 + $0x10] sm:$0xff] %vm1107_vm9, %v1093_v52  ;;  %v1094_v62 = vadd.f32 %v1078_v55, %v3183_v11  ;;  %v1080_v42 = vmul.f32 1.6448536, %v1004_v58  ;;  %v3323_v6 = vmax.f32 %v941_v51, 0.0  ;;  %v942_v43 = vsub.f32 %v3274_v27, %v926_v39  ;;  %v863_v11 = vld [vmem:[#allocation5 + $0x60] sm:$0xff]  ;;  %v897_v27 = vld [vmem:[#allocation6 + $0x70] sm:$0xff] }
 0x2b4   : > { %v1095_v2 = vadd.f32 %v1079_v54, %v3187_v17  ;;  %v1008_v3 = vsel %vm1007_vm15, %v3236_v57, %v1006_v59  ;;  %2369 = vrsqrt.f32 %v3317_v0  ;;  %vm1014_vm1 = vcmp.eq.f32.partialorder %v3263_v22, inf }
 0x2b5   : > { %1111 = vst.msk [vmem:[#allocation7 + $0x18] sm:$0xff] %vm1107_vm9, %v1094_v62  ;;  %v1096_v5 = vadd.f32 %v1080_v42, %v3189_v19  ;;  %v1011_v7 = vsel %vm1009_vm0, %v1010_v41, %v1008_v3  ;;  %v2366_v9 = vpop.eup %2365  ;;  %v1017_v57 = vand.u32 2147483648, %v3263_v22  ;;  %2371 = vrsqrt.f32 %v3323_v6 }
 0x2b6   : > { %1112 = vst.msk [vmem:[#allocation7 + $0x20] sm:$0xff] %vm1107_vm9, %v1095_v2  ;;  %v1081_v17 = vmul.f32 1.6448536, %v1011_v7  ;;  %v1013_v19 = vmul.f32 %v2366_v9, %v3263_v22  ;;  %vm1016_vm2 = vcmp.eq.f32.partialorder %v3263_v22, 0.0  ;;  %vm1021_vm3 = vcmp.eq.f32.partialorder %v3272_v26, inf  ;;  %v2368_v33 = vpop.eup %2367 }
 0x2b7   : > { %1113 = vst.msk [vmem:[#allocation7 + $0x28] sm:$0xff] %vm1107_vm9, %v1096_v5  ;;  %vm1023_vm4 = vcmp.eq.f32.partialorder %v3272_v26, 0.0  ;;  %v1024_v15 = vand.u32 2147483648, %v3272_v26  ;;  %v3340_v16 = vmax.f32 %v942_v43, 0.0  ;;  %v3342_v20 = vmul.f32 0.001953125, %v863_v11 }
 0x2b8   : > { %v1097_v14 = vadd.f32 %v1081_v17, %v3197_v28  ;;  %v1015_v21 = vsel %vm1014_vm1, %v3263_v22, %v1013_v19  ;;  %v911_v23 = vmul.f32 0.001953125, %v895_v8  ;;  %v3345_v24 = vmul.f32 0.001953125, %v864_v10 }
 0x2b9   : > { %v3347_v25 = vmul.f32 0.001953125, %v865_v12  ;;  %v1018_v28 = vsel %vm1016_vm2, %v1017_v57, %v1015_v21  ;;  %vm1028_vm5 = vcmp.eq.f32.partialorder %v3317_v0, inf  ;;  %2373 = vrsqrt.f32 %v3340_v16 }
 0x2ba   : > { %1114 = vst.msk [vmem:[#allocation7 + $0x30] sm:$0xff] %vm1107_vm9, %v1097_v14  ;;  %v912_v34 = vmul.f32 0.001953125, %v896_v13  ;;  %v1082_v30 = vmul.f32 1.6448536, %v1018_v28  ;;  %v1020_v36 = vmul.f32 %v2368_v33, %v3272_v26  ;;  %vm1030_vm6 = vcmp.eq.f32.partialorder %v3317_v0, 0.0 }
 0x2bb   : > { %v927_v37 = vmul.f32 %v3342_v20, %v3342_v20  ;;  %v928_v38 = vmul.f32 %v3345_v24, %v3345_v24  ;;  %v913_v39 = vmul.f32 0.001953125, %v897_v27  ;;  %v929_v22 = vmul.f32 %v3347_v25, %v3347_v25 }
 0x2bc   : > { %v3362_v40 = vmul.f32 0.001953125, %v866_v29  ;;  %v1098_v31 = vadd.f32 %v1082_v30, %v3220_v46  ;;  %v1022_v44 = vsel %vm1021_vm3, %v3272_v26, %v1020_v36  ;;  %v914_v48 = vmul.f32 0.001953125, %v898_v35 }
 0x2bd   : > { %v943_v45 = vsub.f32 %v911_v23, %v927_v37  ;;  %v1025_v49 = vsel %vm1023_vm4, %v1024_v15, %v1022_v44  ;;  %v944_v50 = vsub.f32 %v912_v34, %v928_v38  ;;  %v945_v32 = vsub.f32 %v913_v39, %v929_v22 }
 0x2be   : > { %v930_v51 = vmul.f32 %v3362_v40, %v3362_v40  ;;  %v2370_v52 = vpop.eup %2369  ;;  %1115 = vst.msk [vmem:[#allocation7 + $0x38] sm:$0xff] %vm1107_vm9, %v1098_v31  ;;  %v1083_v61 = vmul.f32 1.6448536, %v1025_v49  ;;  %v1031_v46 = vand.u32 2147483648, %v3317_v0  ;;  %vm1035_vm7 = vcmp.eq.f32.partialorder %v3323_v6, inf }
 0x2bf   : > { %v959_v63 = vmax.f32 %v943_v45, 0.0  ;;  %v2372_v53 = vpop.eup %2371  ;;  %v1027_v55 = vmul.f32 %v2370_v52, %v3317_v0  ;;  %v1038_v26 = vand.u32 2147483648, %v3323_v6  ;;  %v960_v56 = vmax.f32 %v944_v50, 0.0 }
 0x2c0   : > { %v961_v4 = vmax.f32 %v945_v32, 0.0  ;;  %v1099_v41 = vadd.f32 %v1083_v61, %v3222_v47  ;;  %v1034_v54 = vmul.f32 %v2372_v53, %v3323_v6  ;;  %vm1037_vm8 = vcmp.eq.f32.partialorder %v3323_v6, 0.0 }
 0x2c1   : > { %2375 = vrsqrt.f32 %v959_v63  ;;  %v1029_v58 = vsel %vm1028_vm5, %v3317_v0, %v1027_v55  ;;  %v946_v59 = vsub.f32 %v914_v48, %v930_v51  ;;  %vm1042_vm10 = vcmp.eq.f32.partialorder %v3340_v16, inf }
 0x2c2   : > { %2377 = vrsqrt.f32 %v960_v56  ;;  %1116 = vst.msk [vmem:[#allocation7 + $0x40] sm:$0xff] %vm1107_vm9, %v1099_v41  ;;  %v1032_v62 = vsel %vm1030_vm6, %v1031_v46, %v1029_v58  ;;  %v1036_v47 = vsel %vm1035_vm7, %v3323_v6, %v1034_v54  ;;  %v1045_v43 = vand.u32 2147483648, %v3340_v16 }
 0x2c3   : > { %v2374_v42 = vpop.eup %2373  ;;  %v1084_v2 = vmul.f32 1.6448536, %v1032_v62  ;;  %v1039_v3 = vsel %vm1037_vm8, %v1038_v26, %v1036_v47  ;;  %2379 = vrsqrt.f32 %v961_v4  ;;  %vm1044_vm11 = vcmp.eq.f32.partialorder %v3340_v16, 0.0 }
 0x2c4   : > { %v1085_v5 = vmul.f32 1.6448536, %v1039_v3  ;;  %v1041_v7 = vmul.f32 %v2374_v42, %v3340_v16  ;;  %v962_v11 = vmax.f32 %v946_v59, 0.0  ;;  %vm1049_vm12 = vcmp.eq.f32.partialorder %v959_v63, inf }
 0x2c5   : > { %v1100_v0 = vadd.f32 %v1084_v2, %v3242_v60  ;;  %v1052_v12 = vand.u32 2147483648, %v959_v63  ;;  %vm1051_vm13 = vcmp.eq.f32.partialorder %v959_v63, 0.0  ;;  %vm1056_vm14 = vcmp.eq.f32.partialorder %v960_v56, inf }
 0x2c6   : > { %v1101_v8 = vadd.f32 %v1085_v5, %v3247_v1  ;;  %v1043_v6 = vsel %vm1042_vm10, %v3340_v16, %v1041_v7  ;;  %2381 = vrsqrt.f32 %v962_v11  ;;  %v1059_v60 = vand.u32 2147483648, %v960_v56 }
 0x2c7   : > { %1117 = vst.msk [vmem:[#allocation7 + $0x48] sm:$0xff] %vm1107_vm9, %v1100_v0  ;;  %v1046_v9 = vsel %vm1044_vm11, %v1045_v43, %v1043_v6  ;;  %vm1058_vm15 = vcmp.eq.f32.partialorder %v960_v56, 0.0  ;;  %vm1063_vm0 = vcmp.eq.f32.partialorder %v961_v4, inf  ;;  %v1066_v16 = vand.u32 2147483648, %v961_v4 }
 0x2c8   : > { %1118 = vst.msk [vmem:[#allocation7 + $0x50] sm:$0xff] %vm1107_vm9, %v1101_v8  ;;  %v1086_v17 = vmul.f32 1.6448536, %v1046_v9  ;;  %vm1065_vm1 = vcmp.eq.f32.partialorder %v961_v4, 0.0  ;;  %vm1070_vm2 = vcmp.eq.f32.partialorder %v962_v11, inf  ;;  %v1073_v36 = vand.u32 2147483648, %v962_v11 }
 0x2c9   : > { %vm1072_vm3 = vcmp.eq.f32.partialorder %v962_v11, 0.0 }
 0x2ca   : > { %v1102_v10 = vadd.f32 %v1086_v17, %v3257_v18 }
 0x2cb   : > { %v2376_v57 = vpop.eup %2375 }
 0x2cc   : > { %v2378_v19 = vpop.eup %2377  ;;  %v1048_v13 = vmul.f32 %v2376_v57, %v959_v63  ;;  %1119 = vst.msk [vmem:[#allocation7 + $0x58] sm:$0xff] %vm1107_vm9, %v1102_v10 }
 0x2cd   : > { %v1055_v1 = vmul.f32 %v2378_v19, %v960_v56  ;;  %v2380_v14 = vpop.eup %2379 }
 0x2ce   : > { %v1050_v15 = vsel %vm1049_vm12, %v959_v63, %v1048_v13  ;;  %v1062_v27 = vmul.f32 %v2380_v14, %v961_v4 }
 0x2cf   : > { %v1053_v21 = vsel %vm1051_vm13, %v1052_v12, %v1050_v15  ;;  %v1057_v23 = vsel %vm1056_vm14, %v960_v56, %v1055_v1 }
 0x2d0   : > { %v1087_v18 = vmul.f32 1.6448536, %v1053_v21  ;;  %v1060_v29 = vsel %vm1058_vm15, %v1059_v60, %v1057_v23  ;;  %v1064_v28 = vsel %vm1063_vm0, %v961_v4, %v1062_v27  ;;  %v2382_v34 = vpop.eup %2381 }
 0x2d1   : > { %v1088_v33 = vmul.f32 1.6448536, %v1060_v29  ;;  %v1067_v30 = vsel %vm1065_vm1, %v1066_v16, %v1064_v28  ;;  %v1069_v39 = vmul.f32 %v2382_v34, %v962_v11 }
 0x2d2   : > { %v1103_v35 = vadd.f32 %v1087_v18, %v3342_v20  ;;  %v1089_v38 = vmul.f32 1.6448536, %v1067_v30 }
 0x2d3   : > { %v1104_v37 = vadd.f32 %v1088_v33, %v3345_v24  ;;  %v1071_v31 = vsel %vm1070_vm2, %v962_v11, %v1069_v39 }
 0x2d4   : > { %1120 = vst.msk [vmem:[#allocation7 + $0x60] sm:$0xff] %vm1107_vm9, %v1103_v35  ;;  %v1105_v22 = vadd.f32 %v1089_v38, %v3347_v25  ;;  %v1074_v44 = vsel %vm1072_vm3, %v1073_v36, %v1071_v31 }
 0x2d5   : > { %1121 = vst.msk [vmem:[#allocation7 + $0x68] sm:$0xff] %vm1107_vm9, %v1104_v37  ;;  %v1090_v45 = vmul.f32 1.6448536, %v1074_v44 }
 0x2d6   : > { %1122 = vst.msk [vmem:[#allocation7 + $0x70] sm:$0xff] %vm1107_vm9, %v1105_v22 }
 0x2d7   : > { %v1106_v20 = vadd.f32 %v1090_v45, %v3362_v40 }
 0x2d9   : > { %1123 = vst.msk [vmem:[#allocation7 + $0x78] sm:$0xff] %vm1107_vm9, %v1106_v20 }
 0x2da PF: > { %s3754_s5 = sld [smem:[#allocation20_spill]] }
 0x2e0   : > { %p1987_p9 = scmp.lt.s32.totalorder %s3754_s5, 4 }
 0x2e1   : > { %v1164_v24 = vld [vmem:[#allocation7 + $0x40] sm:$0xff] (!%p1987_p9)  ;;  %v2681_v49 = vmov (!%p1987_p9), 0   ;;  %v1165_v25 = vld [vmem:[#allocation7 + $0x48] sm:$0xff] (!%p1987_p9)  ;;  %v1159_v32 = vld [vmem:[#allocation7 + $0x18] sm:$0xff] (!%p1987_p9)  ;;  %s3755_s0 = sld [smem:[#allocation20_spill]] (!%p1987_p9) }
 0x2e2   : > { %1127 = sbr.rel (%p1987_p9) target bundleno = 1151 (0x47f), region = 60  ;;  %v1156_v48 = vld [vmem:[#allocation7] sm:$0xff] (!%p1987_p9)  ;;  %2384 = vset.pattern.permute.xlu1 (!%p1987_p9), %v2681_v49  ;;  %2383 = vset.pattern.permute.xlu0 (!%p1987_p9), %v2681_v49  ;;  %v1157_v50 = vld [vmem:[#allocation7 + $0x8] sm:$0xff] (!%p1987_p9)  ;;  %v1158_v40 = vld [vmem:[#allocation7 + $0x10] sm:$0xff] (!%p1987_p9) }
 0x2e3   : > { %1214 = vperm.xlu1 (!%p1987_p9), %2384, %v1164_v24   ;;  %1174 = vperm.xlu0 (!%p1987_p9), %2383, %v1156_v48   ;;  %v1167_v51 = vld [vmem:[#allocation7 + $0x58] sm:$0xff] (!%p1987_p9)  ;;  %v2385_v52 = vld [vmem:[%s3045_s22] sm:$0xff] (!%p1987_p9)   ;;  %v1166_v61 = vld [vmem:[#allocation7 + $0x50] sm:$0xff] (!%p1987_p9) }
 0x2e4   : > { %2109 = vmatprep.subr.bf16.mxu0 (!%p1987_p9), %v2385_v52  ;;  %2157 = vmatprep.subr.bf16.mxu1 (!%p1987_p9), %v2385_v52  ;;  %v2386_v46 = vld [vmem:[%s3045_s22 + $0x8] sm:$0xff] (!%p1987_p9)   ;;  %v1160_v53 = vld [vmem:[#allocation7 + $0x20] sm:$0xff] (!%p1987_p9)  ;;  %v2387_v55 = vld [vmem:[%s3045_s22 + $0x10] sm:$0xff] (!%p1987_p9)  }
 0x2e5   : > { %2110 = vmatpush3.bf16.msra.mxu0 (!%p1987_p9), %v2385_v52  ;;  %2165 = vmatpush3.bf16.msra.mxu1 (!%p1987_p9), %v2385_v52  ;;  %v1161_v63 = vld [vmem:[#allocation7 + $0x28] sm:$0xff] (!%p1987_p9)  ;;  %v1168_v56 = vld [vmem:[#allocation7 + $0x60] sm:$0xff] (!%p1987_p9)  ;;  %v2388_v4 = vld [vmem:[%s3045_s22 + $0x18] sm:$0xff] (!%p1987_p9)  }
 0x2e6   : > { %2111 = vmatprep.subr.bf16.mxu0 (!%p1987_p9), %v2386_v46  ;;  %2158 = vmatprep.subr.bf16.mxu1 (!%p1987_p9), %v2386_v46  ;;  %v1169_v26 = vld [vmem:[#allocation7 + $0x68] sm:$0xff] (!%p1987_p9)  ;;  %v1163_v41 = vld [vmem:[#allocation7 + $0x38] sm:$0xff] (!%p1987_p9)  ;;  %v1162_v54 = vld [vmem:[#allocation7 + $0x30] sm:$0xff] (!%p1987_p9) }
 0x2e7   : > { %1219 = vperm.xlu1 (!%p1987_p9), %2384, %v1165_v25   ;;  %1179 = vperm.xlu0 (!%p1987_p9), %2383, %v1157_v50   ;;  %v2389_v58 = vld [vmem:[%s3045_s22 + $0x20] sm:$0xff] (!%p1987_p9)   ;;  %v1171_v59 = vld [vmem:[#allocation7 + $0x78] sm:$0xff] (!%p1987_p9)  ;;  %v1170_v62 = vld [vmem:[#allocation7 + $0x70] sm:$0xff] (!%p1987_p9)  ;;  %s1988_s3 = sadd.s32 (!%p1987_p9), 4294967292, %s3755_s0 }
 0x2e8   : > { %v2390_v47 = vld [vmem:[%s3045_s22 + $0x28] sm:$0xff] (!%p1987_p9)   ;;  %v2391_v42 = vld [vmem:[%s3045_s22 + $0x30] sm:$0xff] (!%p1987_p9)   ;;  %v2392_v2 = vld [vmem:[%s3045_s22 + $0x38] sm:$0xff] (!%p1987_p9)   ;;  %s3418_s30 = sshll.u32 (!%p1987_p9), %s1988_s3, 6 }
 0x2e9   : > { %2112 = vmatpush3.bf16.msra.mxu0 %v2386_v46  ;;  %2166 = vmatpush3.bf16.msra.mxu1 %v2386_v46  ;;  %s1131_s2 = scalar_lea.vmem [#allocation3], %s3418_s30  ;;  %s3446_s11 = scalar_lea.vmem [#allocation4], %s3418_s30 }
 0x2ea   : > { %2113 = vmatprep.subr.bf16.mxu0 %v2387_v55  ;;  %2159 = vmatprep.subr.bf16.mxu1 %v2387_v55  ;;  %v1136_v3 = vld [vmem:[%s1131_s2 + $0x20] sm:$0xff]  ;;  %v1133_v57 = vld [vmem:[%s1131_s2 + $0x8] sm:$0xff]  ;;  %v3425_v13 = vld [vmem:[%s1131_s2 + $0x10] sm:$0xff] }
 0x2eb   : > { %1189 = vperm.xlu1 %2384, %v1159_v32   ;;  %1184 = vperm.xlu0 %2383, %v1158_v40   ;;  %v1132_v43 = vld [vmem:[%s1131_s2] sm:$0xff]  ;;  %v1148_v5 = vunpack.c.l.bf16 %v1136_v3  ;;  %v1149_v9 = vunpack.c.h.bf16 %v1136_v3  ;;  %v1137_v10 = vld [vmem:[%s1131_s2 + $0x28] sm:$0xff]  ;;  %v3427_v60 = vld [vmem:[%s1131_s2 + $0x30] sm:$0xff]  ;;  %v1143_v15 = vunpack.c.h.bf16 %v1133_v57  ;;  %v1142_v16 = vunpack.c.l.bf16 %v1133_v57 }
 0x2ec   : > { %v1140_v7 = vunpack.c.l.bf16 %v1132_v43  ;;  %v1141_v17 = vunpack.c.h.bf16 %v1132_v43  ;;  %v1151_v21 = vunpack.c.h.bf16 %v1137_v10  ;;  %v1150_v23 = vunpack.c.l.bf16 %v1137_v10  ;;  %v3431_v28 = vld [vmem:[%s1131_s2 + $0x18] sm:$0xff]  ;;  %v3449_v44 = vld [vmem:[%s3446_s11] sm:$0xff] }
 0x2ed   : > { %2114 = vmatpush3.bf16.msra.mxu0 %v2387_v55  ;;  %2167 = vmatpush3.bf16.msra.mxu1 %v2387_v55  ;;  %v3433_v34 = vld [vmem:[%s1131_s2 + $0x38] sm:$0xff]  ;;  %v1145_v35 = vunpack.c.h.bf16 %v3425_v13  ;;  %v1144_v30 = vunpack.c.l.bf16 %v3425_v13  ;;  %v1153_v36 = vunpack.c.h.bf16 %v3427_v60  ;;  %v1152_v37 = vunpack.c.l.bf16 %v3427_v60  ;;  %v3452_v45 = vld [vmem:[%s3446_s11 + $0x20] sm:$0xff] }
 0x2ee   : > { %2115 = vmatprep.subr.bf16.mxu0 %v2388_v4  ;;  %2160 = vmatprep.subr.bf16.mxu1 %v2388_v4  ;;  %v1147_v48 = vunpack.c.h.bf16 %v3431_v28  ;;  %v1146_v49 = vunpack.c.l.bf16 %v3431_v28  ;;  %v1155_v25 = vunpack.c.h.bf16 %v3433_v34  ;;  %v1154_v50 = vunpack.c.l.bf16 %v3433_v34 }
 0x2ef   : > { %1229 = vperm.xlu1 %2384, %v1167_v51   ;;  %1224 = vperm.xlu0 %2383, %v1166_v61   ;;  %v3461_v61 = vld [vmem:[%s3446_s11 + $0x8] sm:$0xff]  ;;  %v1294_v46 = vunpack.c.l.bf16 %v3449_v44 }
 0x2f1   : > { %2116 = vmatpush3.bf16.msra.mxu0 %v2388_v4  ;;  %2168 = vmatpush3.bf16.msra.mxu1 %v2388_v4 }
 0x2f2   : > { %2117 = vmatprep.subr.bf16.mxu0 %v2389_v58  ;;  %2161 = vmatprep.subr.bf16.mxu1 %v2389_v58 }
 0x2f3   : > { %1199 = vperm.xlu1 %2384, %v1161_v63   ;;  %1194 = vperm.xlu0 %2383, %v1160_v53   ;;  %v1302_v53 = vunpack.c.l.bf16 %v3452_v45 }
 0x2f5   : > { %2118 = vmatpush3.bf16.msra.mxu0 %v2389_v58  ;;  %2169 = vmatpush3.bf16.msra.mxu1 %v2389_v58 }
 0x2f6   : > { %2119 = vmatprep.subr.bf16.mxu0 %v2390_v47  ;;  %2162 = vmatprep.subr.bf16.mxu1 %v2390_v47 }
 0x2f7   : > { %1239 = vperm.xlu1 %2384, %v1169_v26   ;;  %1234 = vperm.xlu0 %2383, %v1168_v56  }
 0x2f9   : > { %2120 = vmatpush3.bf16.msra.mxu0 %v2390_v47  ;;  %2170 = vmatpush3.bf16.msra.mxu1 %v2390_v47  ;;  %v1303_v47 = vunpack.c.h.bf16 %v3452_v45 }
 0x2fa   : > { %2121 = vmatprep.subr.bf16.mxu0 %v2391_v42  ;;  %2163 = vmatprep.subr.bf16.mxu1 %v2391_v42 }
 0x2fb   : > { %1209 = vperm.xlu1 %2384, %v1163_v41   ;;  %1204 = vperm.xlu0 %2383, %v1162_v54  }
 0x2fd   : > { %2122 = vmatpush3.bf16.msra.mxu0 %v2391_v42  ;;  %2171 = vmatpush3.bf16.msra.mxu1 %v2391_v42  ;;  %v1296_v42 = vunpack.c.l.bf16 %v3461_v61 }
 0x2fe   : > { %2123 = vmatprep.subr.bf16.mxu0 %v2392_v2  ;;  %2164 = vmatprep.subr.bf16.mxu1 %v2392_v2 }
 0x2ff   : > { %1249 = vperm.xlu1 %2384, %v1171_v59   ;;  %1244 = vperm.xlu0 %2383, %v1170_v62   ;;  %v1295_v59 = vunpack.c.h.bf16 %v3449_v44 }
 0x301   : > { %2124 = vmatpush3.bf16.msra.mxu0 %v2392_v2  ;;  %2172 = vmatpush3.bf16.msra.mxu1 %v2392_v2 }
 0x362   : > { %v1215_v0 = vpop.permute.xlu1 %1214  ;;  %v1175_v11 = vpop.permute.xlu0 %1174 }
 0x363   : > { %v1260_v8 = vsub.f32 %v1148_v5, %v1215_v0  ;;  %v1252_v6 = vsub.f32 %v1140_v7, %v1175_v11 }
 0x365   : > { %v3421_v12 = vmax.f32 %v1260_v8, 0.0  ;;  %v3423_v19 = vmax.f32 %v1252_v6, 0.0 }
 0x366   : > { %v1220_v1 = vpop.permute.xlu1 %1219  ;;  %v1180_v14 = vpop.permute.xlu0 %1179 }
 0x367   : > { %v1334_v27 = vmul.f32 0.044715, %v3421_v12  ;;  %v1326_v18 = vmul.f32 0.044715, %v3423_v19  ;;  %v1261_v29 = vsub.f32 %v1149_v9, %v1220_v1  ;;  %v1253_v33 = vsub.f32 %v1141_v17, %v1180_v14 }
 0x369   : > { %v1350_v38 = vmul.f32 %v1334_v27, %v3421_v12  ;;  %v1342_v39 = vmul.f32 %v1326_v18, %v3423_v19  ;;  %v3441_v22 = vmax.f32 %v1261_v29, 0.0  ;;  %v3443_v31 = vmax.f32 %v1253_v33, 0.0 }
 0x36a   : > { %v1190_v20 = vpop.permute.xlu1 %1189  ;;  %v1185_v24 = vpop.permute.xlu0 %1184 }
 0x36b   : > { %v1335_v32 = vmul.f32 0.044715, %v3441_v22  ;;  %v1327_v40 = vmul.f32 0.044715, %v3443_v31  ;;  %v1255_v51 = vsub.f32 %v1143_v15, %v1190_v20  ;;  %v1254_v52 = vsub.f32 %v1142_v16, %v1185_v24 }
 0x36c   : > { %v1358_v63 = vmul.f32 %v1342_v39, %v3423_v19  ;;  %v1366_v55 = vmul.f32 %v1350_v38, %v3421_v12  ;;  %v1297_v15 = vunpack.c.h.bf16 %v3461_v61  ;;  %v1310_v24 = vmul.f32 0.5, %v3423_v19 }
 0x36d   : > { %v1351_v26 = vmul.f32 %v1335_v32, %v3441_v22  ;;  %v1343_v56 = vmul.f32 %v1327_v40, %v3443_v31  ;;  %v3469_v4 = vmax.f32 %v1255_v51, 0.0  ;;  %v3471_v41 = vmax.f32 %v1254_v52, 0.0 }
 0x36e   : > { %v1230_v54 = vpop.permute.xlu1 %1229  ;;  %v1225_v58 = vpop.permute.xlu0 %1224  ;;  %v1374_v62 = vadd.f32 %v1358_v63, %v3423_v19  ;;  %v1382_v8 = vadd.f32 %v1366_v55, %v3421_v12  ;;  %v3509_v19 = vmul.f32 0.5, %v3421_v12 }
 0x36f   : > { %v1329_v2 = vmul.f32 0.044715, %v3469_v4  ;;  %v1328_v3 = vmul.f32 0.044715, %v3471_v41  ;;  %v1263_v43 = vsub.f32 %v1151_v21, %v1230_v54  ;;  %v1262_v5 = vsub.f32 %v1150_v23, %v1225_v58 }
 0x370   : > { %v1359_v7 = vmul.f32 %v1343_v56, %v3443_v31  ;;  %v1390_v0 = vmul.f32 0.7978846, %v1374_v62  ;;  %v1367_v11 = vmul.f32 %v1351_v26, %v3441_v22  ;;  %v1398_v38 = vmul.f32 0.7978846, %v1382_v8 }
 0x371   : > { %v1345_v6 = vmul.f32 %v1329_v2, %v3469_v4  ;;  %v1344_v9 = vmul.f32 %v1328_v3, %v3471_v41  ;;  %v3484_v17 = vmax.f32 %v1263_v43, 0.0  ;;  %v3486_v57 = vmax.f32 %v1262_v5, 0.0 }
 0x372   : > { %v1200_v10 = vpop.permute.xlu1 %1199  ;;  %v1195_v13 = vpop.permute.xlu0 %1194  ;;  %v1375_v1 = vadd.f32 %v1359_v7, %v3443_v31  ;;  %2393 = vtanh.f32 %v1390_v0  ;;  %v1383_v14 = vadd.f32 %v1367_v11, %v3441_v22 }
 0x373   : > { %v1361_v16 = vmul.f32 %v1345_v6, %v3469_v4  ;;  %v1360_v21 = vmul.f32 %v1344_v9, %v3471_v41  ;;  %v1337_v23 = vmul.f32 0.044715, %v3484_v17  ;;  %v1336_v27 = vmul.f32 0.044715, %v3486_v57 }
 0x374   : > { %v1257_v18 = vsub.f32 %v1145_v35, %v1200_v10  ;;  %v1256_v29 = vsub.f32 %v1144_v30, %v1195_v13  ;;  %v1391_v33 = vmul.f32 0.7978846, %v1375_v1  ;;  %v1399_v32 = vmul.f32 0.7978846, %v1383_v14 }
 0x375   : > { %v1376_v39 = vadd.f32 %v1360_v21, %v3471_v41  ;;  %v1352_v20 = vmul.f32 %v1336_v27, %v3486_v57  ;;  %v1377_v40 = vadd.f32 %v1361_v16, %v3469_v4  ;;  %v1353_v35 = vmul.f32 %v1337_v23, %v3484_v17 }
 0x376   : > { %v3499_v51 = vmax.f32 %v1257_v18, 0.0  ;;  %v3501_v52 = vmax.f32 %v1256_v29, 0.0  ;;  %v1240_v63 = vpop.permute.xlu1 %1239  ;;  %v1235_v55 = vpop.permute.xlu0 %1234  ;;  %2395 = vtanh.f32 %v1391_v33  ;;  %v1319_v9 = vmul.f32 0.5, %v3441_v22 }
 0x377   : > { %v1265_v30 = vsub.f32 %v1153_v36, %v1240_v63  ;;  %v1264_v26 = vsub.f32 %v1152_v37, %v1235_v55  ;;  %2397 = vtanh.f32 %v1398_v38  ;;  %v1392_v58 = vmul.f32 0.7978846, %v1376_v39 }
 0x378   : > { %v1331_v56 = vmul.f32 0.044715, %v3499_v51  ;;  %v1330_v54 = vmul.f32 0.044715, %v3501_v52  ;;  %v1368_v62 = vmul.f32 %v1352_v20, %v3486_v57  ;;  %v1311_v36 = vmul.f32 0.5, %v3443_v31 }
 0x379   : > { %v3514_v2 = vmax.f32 %v1265_v30, 0.0  ;;  %v3516_v3 = vmax.f32 %v1264_v26, 0.0  ;;  %2399 = vtanh.f32 %v1399_v32  ;;  %v1393_v5 = vmul.f32 0.7978846, %v1377_v40 }
 0x37a   : > { %v1347_v60 = vmul.f32 %v1331_v56, %v3499_v51  ;;  %v1346_v37 = vmul.f32 %v1330_v54, %v3501_v52  ;;  %v1210_v12 = vpop.permute.xlu1 %1209  ;;  %v1205_v43 = vpop.permute.xlu0 %1204  ;;  %v1369_v31 = vmul.f32 %v1353_v35, %v3484_v17  ;;  %v1312_v10 = vmul.f32 0.5, %v3471_v41 }
 0x37b   : > { %v1339_v7 = vmul.f32 0.044715, %v3514_v2  ;;  %v1338_v0 = vmul.f32 0.044715, %v3516_v3  ;;  %v1259_v11 = vsub.f32 %v1147_v48, %v1210_v12  ;;  %v1258_v8 = vsub.f32 %v1146_v49, %v1205_v43 }
 0x37c   : > { %v2394_v6 = vpop.eup %2393  ;;  %2401 = vtanh.f32 %v1392_v58  ;;  %v1363_v13 = vmul.f32 %v1347_v60, %v3499_v51  ;;  %v1362_v1 = vmul.f32 %v1346_v37, %v3501_v52  ;;  %v1313_v23 = vmul.f32 0.5, %v3469_v4 }
 0x37d   : > { %v3532_v14 = vmax.f32 %v1259_v11, 0.0  ;;  %v3534_v16 = vmax.f32 %v1258_v8, 0.0  ;;  %v1355_v48 = vmul.f32 %v1339_v7, %v3514_v2  ;;  %v1422_v21 = vadd.f32 1.0, %v2394_v6 }
 0x37e   : > { %v1250_v28 = vpop.permute.xlu1 %1249  ;;  %v1245_v49 = vpop.permute.xlu0 %1244  ;;  %2403 = vtanh.f32 %v1393_v5  ;;  %v1384_v22 = vadd.f32 %v1368_v62, %v3486_v57  ;;  %v1354_v41 = vmul.f32 %v1338_v0, %v3516_v3  ;;  %v1385_v33 = vadd.f32 %v1369_v31, %v3484_v17 }
 0x37f   : > { %v1333_v27 = vmul.f32 0.044715, %v3532_v14  ;;  %v1332_v18 = vmul.f32 0.044715, %v3534_v16  ;;  %v1267_v38 = vsub.f32 %v1155_v25, %v1250_v28  ;;  %v1266_v39 = vsub.f32 %v1154_v50, %v1245_v49 }
 0x380   : > { %v2396_v29 = vpop.eup %2395  ;;  %v1438_v20 = vmul.f32 %v1422_v21, %v1310_v24  ;;  %v1379_v4 = vadd.f32 %v1363_v13, %v3499_v51  ;;  %v1378_v32 = vadd.f32 %v1362_v1, %v3501_v52  ;;  %v1371_v35 = vmul.f32 %v1355_v48, %v3514_v2 }
 0x381   : > { %v1349_v40 = vmul.f32 %v1333_v27, %v3532_v14  ;;  %v1348_v63 = vmul.f32 %v1332_v18, %v3534_v16  ;;  %v2398_v55 = vpop.eup %2397  ;;  %v3552_v30 = vmax.f32 %v1267_v38, 0.0  ;;  %v3554_v26 = vmax.f32 %v1266_v39, 0.0  ;;  %v1291_v39 = vld [vmem:[%s3446_s11 + $0x28] sm:$0xff] }
 0x382   : > { %v1423_v25 = vadd.f32 1.0, %v2396_v29  ;;  %v1370_v34 = vmul.f32 %v1354_v41, %v3516_v3  ;;  %v1454_v50 = vmul.f32 %v1438_v20, %v1294_v46  ;;  %v1430_v24 = vadd.f32 1.0, %v2398_v55 }
 0x383   : > { %v1400_v56 = vmul.f32 0.7978846, %v1384_v22  ;;  %v2400_v54 = vpop.eup %2399  ;;  %v1341_v58 = vmul.f32 0.044715, %v3552_v30  ;;  %v1340_v62 = vmul.f32 0.044715, %v3554_v26  ;;  %v1365_v12 = vmul.f32 %v1349_v40, %v3532_v14 }
 0x384   : > { %v1439_v60 = vmul.f32 %v1423_v25, %v1311_v36  ;;  %v1401_v37 = vmul.f32 0.7978846, %v1385_v33  ;;  %v1364_v43 = vmul.f32 %v1348_v63, %v3534_v16  ;;  %v1431_v5 = vadd.f32 1.0, %v2400_v54 }
 0x385   : > { %v1446_v7 = vmul.f32 %v1430_v24, %v3509_v19  ;;  %v1357_v11 = vmul.f32 %v1341_v58, %v3552_v30  ;;  %v1356_v46 = vmul.f32 %v1340_v62, %v3554_v26  ;;  %2405 = vtanh.f32 %v1400_v56  ;;  %v1292_v56 = vld [vmem:[%s3446_s11 + $0x30] sm:$0xff]  ;;  %v1289_v58 = vld [vmem:[%s3446_s11 + $0x18] sm:$0xff] }
 0x386   : > { %v2402_v0 = vpop.eup %2401  ;;  %v1455_v8 = vmul.f32 %v1439_v60, %v1295_v59  ;;  %v1387_v6 = vadd.f32 %v1371_v35, %v3514_v2  ;;  %v1447_v36 = vmul.f32 %v1431_v5, %v1319_v9  ;;  %2407 = vtanh.f32 %v1401_v37  ;;  %v1293_v37 = vld [vmem:[%s3446_s11 + $0x38] sm:$0xff] }
 0x387   : > { %v1424_v31 = vadd.f32 1.0, %v2402_v0  ;;  %v1386_v1 = vadd.f32 %v1370_v34, %v3516_v3  ;;  %v1373_v48 = vmul.f32 %v1357_v11, %v3552_v30  ;;  %v1372_v19 = vmul.f32 %v1356_v46, %v3554_v26 }
 0x388   : > { %v2404_v13 = vpop.eup %2403  ;;  %v1486_v28 = vpack.c.bf16 %v1455_v8, %v1454_v50  ;;  %v1462_v49 = vmul.f32 %v1446_v7, %v1302_v53  ;;  %v1463_v44 = vmul.f32 %v1447_v36, %v1303_v47  ;;  %v1381_v9 = vadd.f32 %v1365_v12, %v3532_v14  ;;  %v1288_v50 = vld [vmem:[%s3446_s11 + $0x10] sm:$0xff] }
 0x389   : > { %v1425_v59 = vadd.f32 1.0, %v2404_v13  ;;  %v1440_v21 = vmul.f32 %v1424_v31, %v1312_v10  ;;  %v1380_v22 = vadd.f32 %v1364_v43, %v3534_v16  ;;  %v1394_v41 = vmul.f32 0.7978846, %v1378_v32 }
 0x38a   : > { %2125 = vmatprep.mubr.bf16.mxu0 %v1486_v28  ;;  %v1395_v27 = vmul.f32 0.7978846, %v1379_v4  ;;  %v1388_v18 = vadd.f32 %v1372_v19, %v3554_v26  ;;  %v1490_v29 = vpack.c.bf16 %v1463_v44, %v1462_v49  ;;  %v1389_v45 = vadd.f32 %v1373_v48, %v3552_v30 }
 0x38b   : > { %v1441_v33 = vmul.f32 %v1425_v59, %v1313_v23  ;;  %v1456_v53 = vmul.f32 %v1440_v21, %v1296_v42  ;;  %2409 = vtanh.f32 %v1394_v41  ;;  %v1402_v47 = vmul.f32 0.7978846, %v1386_v1 }
 0x38c   : > { %v1403_v10 = vmul.f32 0.7978846, %v1387_v6  ;;  %2133 = vmatprep.mubr.bf16.mxu1 %v1490_v29  ;;  %2411 = vtanh.f32 %v1395_v27  ;;  %v1396_v20 = vmul.f32 0.7978846, %v1380_v22  ;;  %v1397_v4 = vmul.f32 0.7978846, %v1381_v9 }
 0x38d   : > { %v1457_v38 = vmul.f32 %v1441_v33, %v1297_v15  ;;  %2413 = vtanh.f32 %v1402_v47  ;;  %v1404_v23 = vmul.f32 0.7978846, %v1388_v18  ;;  %v1405_v40 = vmul.f32 0.7978846, %v1389_v45 }
 0x38e   : > { %2415 = vtanh.f32 %v1403_v10  ;;  %v1304_v55 = vunpack.c.l.bf16 %v1291_v39  ;;  %v1320_v61 = vmul.f32 0.5, %v3486_v57  ;;  %v1305_v35 = vunpack.c.h.bf16 %v1291_v39 }
 0x38f   : > { %v1487_v32 = vpack.c.bf16 %v1457_v38, %v1456_v53  ;;  %v2406_v42 = vpop.eup %2405  ;;  %2417 = vtanh.f32 %v1396_v20  ;;  %v1321_v25 = vmul.f32 0.5, %v3484_v17  ;;  %v1298_v60 = vunpack.c.l.bf16 %v1288_v50 }
 0x390   : > { %v2408_v63 = vpop.eup %2407  ;;  %v1432_v15 = vadd.f32 1.0, %v2406_v42  ;;  %2419 = vtanh.f32 %v1397_v4  ;;  %v1299_v5 = vunpack.c.h.bf16 %v1288_v50  ;;  %v1306_v57 = vunpack.c.l.bf16 %v1292_v56  ;;  %v1473_v50 = vld [vmem:[#allocation2 + $0x18] sm:$0xff] }
 0x391   : > { %2126 = vmatmul.mubr.bf16.vlgmr.msra.gmra.mrb[0].mxu0 %v1487_v32  ;;  %v1433_v34 = vadd.f32 1.0, %v2408_v63  ;;  %2421 = vtanh.f32 %v1404_v23  ;;  %v1307_v7 = vunpack.c.h.bf16 %v1292_v56  ;;  %v1314_v11 = vmul.f32 0.5, %v3501_v52 }
 0x392   : > { %v1448_v24 = vmul.f32 %v1432_v15, %v1320_v61  ;;  %2423 = vtanh.f32 %v1405_v40  ;;  %v1300_v46 = vunpack.c.l.bf16 %v1289_v58  ;;  %v1301_v8 = vunpack.c.h.bf16 %v1289_v58 }
 0x393   : > { %v1449_v54 = vmul.f32 %v1433_v34, %v1321_v25  ;;  %v1315_v31 = vmul.f32 0.5, %v3499_v51  ;;  %v1308_v1 = vunpack.c.l.bf16 %v1293_v37  ;;  %v1322_v28 = vmul.f32 0.5, %v3516_v3  ;;  %v1472_v25 = vld [vmem:[#allocation2 + $0x10] sm:$0xff] }
 0x394   : > { %v1464_v62 = vmul.f32 %v1448_v24, %v1304_v55  ;;  %v1309_v44 = vunpack.c.h.bf16 %v1293_v37  ;;  %v1323_v52 = vmul.f32 0.5, %v3514_v2  ;;  %v1316_v22 = vmul.f32 0.5, %v3534_v16 }
 0x395   : > { %v2410_v12 = vpop.eup %2409  ;;  %v1465_v43 = vmul.f32 %v1449_v54, %v1305_v35  ;;  %v1317_v51 = vmul.f32 0.5, %v3532_v14  ;;  %v1324_v47 = vmul.f32 0.5, %v3554_v26  ;;  %v1325_v2 = vmul.f32 0.5, %v3552_v30  ;;  %v1470_v30 = vld [vmem:[#allocation2] sm:$0xff]  ;;  %v1471_v54 = vld [vmem:[#allocation2 + $0x8] sm:$0xff] }
 0x396   : > { %v2412_v0 = vpop.eup %2411  ;;  %v1426_v17 = vadd.f32 1.0, %v2410_v12 }
 0x397   : > { %v2414_v6 = vpop.eup %2413  ;;  %v1491_v36 = vpack.c.bf16 %v1465_v43, %v1464_v62  ;;  %v1427_v13 = vadd.f32 1.0, %v2412_v0  ;;  %v1480_v43 = vld [vmem:[#allocation2 + $0x50] sm:$0xff] }
 0x398   : > { %v2416_v48 = vpop.eup %2415  ;;  %v1442_v19 = vmul.f32 %v1426_v17, %v1314_v11  ;;  %v1434_v49 = vadd.f32 1.0, %v2414_v6  ;;  %v1479_v17 = vld [vmem:[#allocation2 + $0x48] sm:$0xff] }
 0x399   : > { %v2418_v59 = vpop.eup %2417  ;;  %2134 = vmatmul.mubr.bf16.vlgmr.msra.gmra.mrb[0].mxu1 %v1491_v36  ;;  %v1443_v21 = vmul.f32 %v1427_v13, %v1315_v31  ;;  %v1435_v9 = vadd.f32 1.0, %v2416_v48  ;;  %v1476_v13 = vld [vmem:[#allocation2 + $0x30] sm:$0xff] }
 0x39a   : > { %v2420_v41 = vpop.eup %2419  ;;  %v1458_v27 = vmul.f32 %v1442_v19, %v1298_v60  ;;  %v1450_v18 = vmul.f32 %v1434_v49, %v1322_v28  ;;  %v1428_v29 = vadd.f32 1.0, %v2418_v59  ;;  %v1477_v19 = vld [vmem:[#allocation2 + $0x38] sm:$0xff]  ;;  %v1484_v28 = vld [vmem:[#allocation2 + $0x70] sm:$0xff]  ;;  %v1475_v59 = vld [vmem:[#allocation2 + $0x28] sm:$0xff] }
 0x39b   : > { %v2422_v33 = vpop.eup %2421  ;;  %v1459_v53 = vmul.f32 %v1443_v21, %v1299_v5  ;;  %v1451_v45 = vmul.f32 %v1435_v9, %v1323_v52  ;;  %v1429_v3 = vadd.f32 1.0, %v2420_v41  ;;  %v1478_v5 = vld [vmem:[#allocation2 + $0x40] sm:$0xff]  ;;  %v1485_v41 = vld [vmem:[#allocation2 + $0x78] sm:$0xff] }
 0x39c   : > { %v2424_v10 = vpop.eup %2423  ;;  %v1466_v38 = vmul.f32 %v1450_v18, %v1306_v57  ;;  %v1444_v39 = vmul.f32 %v1428_v29, %v1316_v22  ;;  %v1436_v20 = vadd.f32 1.0, %v2422_v33  ;;  %v1482_v21 = vld [vmem:[#allocation2 + $0x60] sm:$0xff]  ;;  %v1483_v33 = vld [vmem:[#allocation2 + $0x68] sm:$0xff] }
 0x39d   : > { %v1488_v4 = vpack.c.bf16 %v1459_v53, %v1458_v27  ;;  %v1467_v16 = vmul.f32 %v1451_v45, %v1307_v7  ;;  %v1445_v32 = vmul.f32 %v1429_v3, %v1317_v51  ;;  %v1437_v23 = vadd.f32 1.0, %v2424_v10  ;;  %v1481_v7 = vld [vmem:[#allocation2 + $0x58] sm:$0xff] }
 0x39e   : > { %v1460_v42 = vmul.f32 %v1444_v39, %v1300_v46  ;;  %v1452_v40 = vmul.f32 %v1436_v20, %v1324_v47 }
 0x39f   : > { %2129 = vmatprep.mubr.bf16.mxu0 %v1488_v4  ;;  %v1492_v14 = vpack.c.bf16 %v1467_v16, %v1466_v38  ;;  %v1461_v63 = vmul.f32 %v1445_v32, %v1301_v8  ;;  %v1453_v55 = vmul.f32 %v1437_v23, %v1325_v2 }
 0x3a0   : > { %v1468_v61 = vmul.f32 %v1452_v40, %v1308_v1  ;;  %v1474_v1 = vld [vmem:[#allocation2 + $0x20] sm:$0xff] }
 0x3a1   : > { %2137 = vmatprep.mubr.bf16.mxu1 %v1492_v14  ;;  %v1489_v15 = vpack.c.bf16 %v1461_v63, %v1460_v42  ;;  %v1469_v26 = vmul.f32 %v1453_v55, %v1309_v44 }
 0x3a3   : > { %2130 = vmatmul.mubr.bf16.gmra.mrb[4].mxu0 %v1489_v15  ;;  %v1493_v35 = vpack.c.bf16 %v1469_v26, %v1468_v61 }
 0x3a5   : > { %2138 = vmatmul.mubr.bf16.gmra.mrb[4].mxu1 %v1493_v35 }
 0x464   : > { %v2127_v34 = vpop.f32.mrb[0].mxu0 }
 0x465   : > { %v1657_v24 = vadd.f32 %v2127_v34, %v1472_v25  ;;  %v1592_v56 = vpop.f32.mrb[1].mxu0 }
 0x466   : > { %v1655_v58 = vadd.f32 %v1592_v56, %v1470_v30  ;;  %v2128_v62 = vpop.f32.mrb[2].mxu0 }
 0x467   : > { %1673 = vst [vmem:[#allocation2 + $0x10] sm:$0xff] %v1657_v24  ;;  %v1658_v60 = vadd.f32 %v2128_v62, %v1473_v50  ;;  %v1595_v37 = vpop.f32.mrb[3].mxu0 }
 0x468   : > { %1671 = vst [vmem:[#allocation2] sm:$0xff] %v1655_v58  ;;  %v1656_v12 = vadd.f32 %v1595_v37, %v1471_v54 }
 0x469   : > { %1674 = vst [vmem:[#allocation2 + $0x18] sm:$0xff] %v1658_v60 }
 0x46a   : > { %1672 = vst [vmem:[#allocation2 + $0x8] sm:$0xff] %v1656_v12 }
 0x46c   : > { %v2135_v57 = vpop.f32.mrb[0].mxu1 }
 0x46d   : > { %v1665_v0 = vadd.f32 %v2135_v57, %v1480_v43  ;;  %v1624_v11 = vpop.f32.mrb[1].mxu1 }
 0x46e   : > { %v1663_v46 = vadd.f32 %v1624_v11, %v1478_v5  ;;  %v2136_v8 = vpop.f32.mrb[2].mxu1 }
 0x46f   : > { %1681 = vst [vmem:[#allocation2 + $0x50] sm:$0xff] %v1665_v0  ;;  %v1666_v6 = vadd.f32 %v2136_v8, %v1481_v7  ;;  %v1627_v36 = vpop.f32.mrb[3].mxu1 }
 0x470   : > { %1679 = vst [vmem:[#allocation2 + $0x40] sm:$0xff] %v1663_v46  ;;  %v1664_v31 = vadd.f32 %v1627_v36, %v1479_v17 }
 0x471   : > { %1682 = vst [vmem:[#allocation2 + $0x58] sm:$0xff] %v1666_v6 }
 0x472   : > { %1680 = vst [vmem:[#allocation2 + $0x48] sm:$0xff] %v1664_v31 }
 0x476   : > { %v2131_v48 = vpop.f32.mrb[4].mxu0 }
 0x477   : > { %v1661_v49 = vadd.f32 %v2131_v48, %v1476_v13  ;;  %v1608_v44 = vpop.f32.mrb[5].mxu0 }
 0x478   : > { %v1659_v52 = vadd.f32 %v1608_v44, %v1474_v1  ;;  %v2132_v9 = vpop.f32.mrb[6].mxu0  ;;  %v2139_v22 = vpop.f32.mrb[4].mxu1 }
 0x479   : > { %1677 = vst [vmem:[#allocation2 + $0x30] sm:$0xff] %v1661_v49  ;;  %v1662_v27 = vadd.f32 %v2132_v9, %v1477_v19  ;;  %v1611_v18 = vpop.f32.mrb[7].mxu0  ;;  %v1669_v51 = vadd.f32 %v2139_v22, %v1484_v28  ;;  %v1640_v29 = vpop.f32.mrb[5].mxu1 }
 0x47a   : > { %1675 = vst [vmem:[#allocation2 + $0x20] sm:$0xff] %v1659_v52  ;;  %v1660_v53 = vadd.f32 %v1611_v18, %v1475_v59  ;;  %v1667_v45 = vadd.f32 %v1640_v29, %v1482_v21  ;;  %v2140_v3 = vpop.f32.mrb[6].mxu1 }
 0x47b   : > { %1678 = vst [vmem:[#allocation2 + $0x38] sm:$0xff] %v1662_v27  ;;  %1685 = vst [vmem:[#allocation2 + $0x70] sm:$0xff] %v1669_v51  ;;  %v1670_v47 = vadd.f32 %v2140_v3, %v1485_v41  ;;  %v1643_v10 = vpop.f32.mrb[7].mxu1 }
 0x47c   : > { %1676 = vst [vmem:[#allocation2 + $0x28] sm:$0xff] %v1660_v53  ;;  %1683 = vst [vmem:[#allocation2 + $0x60] sm:$0xff] %v1667_v45  ;;  %v1668_v38 = vadd.f32 %v1643_v10, %v1483_v33 }
 0x47d   : > { %1686 = vst [vmem:[#allocation2 + $0x78] sm:$0xff] %v1670_v47 }
 0x47e   : > { %1684 = vst [vmem:[#allocation2 + $0x68] sm:$0xff] %v1668_v38 }
 0x47f PF: > { %s3756_s20 = sld [smem:[#allocation20_spill]] }
 0x485   : > { %p2000_p10 = scmp.ne.s32.totalorder %s3756_s20, 7 }
 0x486   : > { %v1691_v39 = vld [vmem:[#allocation2] sm:$0xff] (!%p2000_p10)  ;;  %v1692_v2 = vld [vmem:[#allocation2 + $0x8] sm:$0xff] (!%p2000_p10)  ;;  %v1693_v20 = vld [vmem:[#allocation2 + $0x10] sm:$0xff] (!%p2000_p10) }
 0x487   : > { %1690 = sbr.rel (%p2000_p10) target bundleno = 1167 (0x48f), region = 64  ;;  %v2049_v4 = vpack.c.bf16 (!%p2000_p10), %v1692_v2, %v1691_v39  ;;  %v1694_v16 = vld [vmem:[#allocation2 + $0x18] sm:$0xff] (!%p2000_p10)  ;;  %v1695_v32 = vld [vmem:[#allocation2 + $0x20] sm:$0xff] (!%p2000_p10)  ;;  %v1696_v23 = vld [vmem:[#allocation2 + $0x28] sm:$0xff] (!%p2000_p10) }
 0x488   : > { %v2054_v42 = vpack.c.bf16 (!%p2000_p10), %v1694_v16, %v1693_v20  ;;  %v2059_v40 = vpack.c.bf16 (!%p2000_p10), %v1696_v23, %v1695_v32  ;;  %v1697_v14 = vld [vmem:[#allocation2 + $0x30] sm:$0xff] (!%p2000_p10)  ;;  %v1698_v63 = vld [vmem:[#allocation2 + $0x38] sm:$0xff] (!%p2000_p10)  ;;  %v1699_v55 = vld [vmem:[#allocation2 + $0x40] sm:$0xff] (!%p2000_p10) }
 0x489   : > { %2050 = vst [vmem:[%s3051_s6] sm:$0xff] (!%p2000_p10), %v2049_v4   ;;  %v2064_v61 = vpack.c.bf16 (!%p2000_p10), %v1698_v63, %v1697_v14  ;;  %v1700_v15 = vld [vmem:[#allocation2 + $0x48] sm:$0xff] (!%p2000_p10)  ;;  %v1701_v26 = vld [vmem:[#allocation2 + $0x50] sm:$0xff] (!%p2000_p10)  ;;  %v1702_v35 = vld [vmem:[#allocation2 + $0x58] sm:$0xff] (!%p2000_p10) }
 0x48a   : > { %2086 = vst [vmem:[%s3051_s6 + $0x8] sm:$0xff] (!%p2000_p10), %v2054_v42   ;;  %2087 = vst [vmem:[%s3051_s6 + $0x10] sm:$0xff] (!%p2000_p10), %v2059_v40   ;;  %v2069_v25 = vpack.c.bf16 (!%p2000_p10), %v1700_v15, %v1699_v55  ;;  %v2074_v30 = vpack.c.bf16 (!%p2000_p10), %v1702_v35, %v1701_v26  ;;  %v1703_v34 = vld [vmem:[#allocation2 + $0x60] sm:$0xff] (!%p2000_p10)  ;;  %v1704_v50 = vld [vmem:[#allocation2 + $0x68] sm:$0xff] (!%p2000_p10) }
 0x48b   : > { %v1705_v24 = vld [vmem:[#allocation2 + $0x70] sm:$0xff] (!%p2000_p10)  ;;  %2088 = vst [vmem:[%s3051_s6 + $0x18] sm:$0xff] (!%p2000_p10), %v2064_v61   ;;  %v2079_v56 = vpack.c.bf16 (!%p2000_p10), %v1704_v50, %v1703_v34  ;;  %v1706_v54 = vld [vmem:[#allocation2 + $0x78] sm:$0xff] (!%p2000_p10) }
 0x48c   : > { %2089 = vst [vmem:[%s3051_s6 + $0x20] sm:$0xff] (!%p2000_p10), %v2069_v25   ;;  %2090 = vst [vmem:[%s3051_s6 + $0x28] sm:$0xff] (!%p2000_p10), %v2074_v30   ;;  %v2084_v58 = vpack.c.bf16 (!%p2000_p10), %v1706_v54, %v1705_v24 }
 0x48d   : > { %2091 = vst [vmem:[%s3051_s6 + $0x30] sm:$0xff] (!%p2000_p10), %v2079_v56  }
 0x48e   : > { %2092 = vst [vmem:[%s3051_s6 + $0x38] sm:$0xff] %v2084_v58  }
 0x48f PF: > { %s3757_s12 = sld [smem:[#allocation21_spill]]  ;;  %s3758_s7 = sld [smem:[#allocation29_spill]] }
 0x490   : > { %s1801_s28 = sshll.u32 %s3051_s6, 4  ;;  %s1788_s24 = scalar_lea.sflag [#allocation10], %s3026_s15  ;;  %s3615_s28 = int_to_ptr.vmem [resolvable:$true] %s1801_s28 }
 0x491   : > { %s2515_s8 = scalar_lea.vmem %s3615_s28, 1024  ;;  %p3759_p6 = scmp.ne.s32.totalorder %s3732_s9, 0 }
 0x492   : > { %p2516_p8 = scmp.ne.s32.totalorder %s3615_s28, %s2515_s8  ;;  %s2682_s5 = smov [#allocation14]  }
 0x493   : > { %s2519_s0 = sshll.u32 %s2682_s5, 4  ;;  %s2520_s0 = int_to_ptr.vmem [resolvable:$false] %s2519_s0 }
 0x494   : > { %p2517_p1 = pnand %p2516_p8, %p3759_p6  ;;  %s2521_s3 = scalar_lea.vmem %s2520_s0, 2048 }
 0x495   : > { %s2045_s22 = sshll.u32 %s3757_s12, 10  ;;  %p2522_p12 = scmp.lt.s32.totalorder %s3615_s28, %s2520_s0 }
 0x496   : > { %s3612_s10 = scalar_lea.hbm %s3758_s7, %s2045_s22  ;;  %p2518_p5 = pneg %p2517_p1 }
 0x497   : > { %p2523_p13 = scmp.lt.s32.totalorder %s2521_s3, %s2515_s8 }
 0x499   : > { %p2524_p3 = por %p2523_p13, %p2522_p12 }
 0x49b   : > { %p2525_p7 = pnand %p2524_p3, %p2518_p5 }
 0x49d   : > { %2528 = shalt.err (!%p2525_p7)
}
 0x49e   : > { %s2529_s6 = scalar_lea.hbm %s3612_s10, 1024  ;;  %s2533_s11 = scalar_lea.hbm %s3758_s7, 2048 }
 0x49f   : > { %p2530_p11 = scmp.ne.s32.totalorder %s3612_s10, %s2529_s6  ;;  %p2534_p0 = scmp.lt.u32.totalorder %s3612_s10, %s3758_s7 }
 0x4a0   : > { %p2535_p9 = scmp.lt.u32.totalorder %s2533_s11, %s2529_s6  ;;  %p2537_p8 = scmp.lt.u32.totalorder %s2529_s6, %s3612_s10 }
 0x4a1   : > { %p2531_p2 = pnand %p2530_p11, %p3759_p6 }
 0x4a2   : > { %p2536_p10 = por %p2535_p9, %p2534_p0 }
 0x4a3   : > { %p2532_p4 = pneg %p2531_p2 }
 0x4a4   : > { %p2538_p1 = por %p2537_p8, %p2536_p10 }
 0x4a6   : > { %p2539_p5 = pnand %p2538_p1, %p2532_p4 }
 0x4a8   : > { %2542 = shalt.err (!%p2539_p5)
}
 0x4a9   : > { %s2683_s22 = smov 64   ;;  %s2684_s21 = smov 4  }
 0x4aa   : > { %2179 = dma.vmem_to_hbm [thread:$0]  (%p3759_p6), %s3615_s28, 1024, %s3612_s10, %s1788_s24, %s2683_s22, %s2683_s22, %s2684_s21  }
 0x4ab PF: > { %p2196_p12 = scmp.ge.s32.totalorder %s2669_s25, 2  ;;  %s1816_s27 = sand.u32 1, %s2641_s18  }
 0x4ac   : > { %p3760_p13 = scmp.ne.s32.totalorder %s3734_s29, 0  ;;  %s1817_s8 = scalar_lea.sflag [#allocation10], %s1816_s27 }
 0x4ae   : > { %p2192_p3 = pnand %p2196_p12, %p3760_p13 }
 0x4b0   : > { %2612 = dma.done.wait (!%p2192_p3), %s1817_s8, 1024  }
 0x4b1   : > { %2614 = vsyncadd (!%p2192_p3), %s1817_s8, 4294966272  ;;  %s22_s25 = sadd.s32 1, %s2669_s25   ;;  %s3762_s9 = sld [smem:[#allocation23_spill]] }
 0x4b2   : > { %p3646_p7 = scmp.ge.s32.totalorder %s22_s25, 18   ;;  %s3763_s10 = sld [smem:[#allocation19_spill]] }
 0x4b3   : > { %s3764_s20 = sld [smem:[#allocation25_spill]]  ;;  %s3765_s22 = sld [smem:[#allocation22_spill]] }
 0x4b4   : > { %s3766_s24 = sld [smem:[#allocation24_spill]]  ;;  %s3767_s12 = smov %s2621_s13 }
 0x4b5   : > { %s3768_s13 = smov %s2625_s14  ;;  %s3769_s14 = smov %s2979_s4 }
 0x4b6   : > { %s3770_s15 = smov %s2633_s16  ;;  %s3771_s16 = smov %s2637_s17 }
 0x4b7   : > { %s3772_s17 = smov %s3762_s9  ;;  %s3773_s18 = smov %s2645_s19 }
 0x4b8   : > { %s3774_s19 = smov %s3763_s10  ;;  %s3775_s21 = smov %s2661_s23 }
 0x4b9   : > { %s3776_s23 = smov %s3778_s26  ;;  %21 = sbr.rel (!%p3646_p7) target bundleno = 17 (0x11), region = 125 }
 0x4c0   :  { %1822 = vsyncpa [#allocation9], 1 }
 0x4c1   :  { %1824 = vsyncpa [#allocation9 + $0x1], 1 }
 0x4c2   :  { %1825 = vsyncpa [#allocation12], 1 }
 0x4c3   :  { %1827 = vsyncpa [#allocation12 + $0x1], 1 }
 0x4c4   :  { %1828 = vsyncpa [#allocation10], 1 }
 0x4c5   :  { %1830 = vsyncpa [#allocation10 + $0x1], 1 }

</bundles_post_ra>
